<compile_context>
chip_gen: v6e
topology: v6e:2x2x1
jax: 0.10.0
libtpu: 0.0.40
codegen_flags: <defaults>
</compile_context>

<pallas_src>
import functools
import math

import jax
import jax.numpy as jnp
from jax.experimental import pallas as pl
from jax.experimental.pallas import tpu as pltpu

LOG_STD_MIN = -20.0
LOG_STD_MAX = 2.0
HALF_LOG_2PI = 0.5 * math.log(2.0 * math.pi)

_VMEM_BUDGET = 44 << 20   # keep headroom under v7x's 64 MiB physical VMEM
_FAST_PATH_OK = None      # probed on first call: Buffered(1) weights + lane-packed logp


def _round_up(x, m):
    return (x + m - 1) // m * m


def _cdiv(a, b):
    return -(-a // b)


def _pad2(x, rows, cols, dtype=jnp.float32):
    out = jnp.zeros((rows, cols), dtype)
    return out.at[: x.shape[0], : x.shape[1]].set(x.astype(dtype))


def _vmem_bytes(tile_rows, d_pad, h_pad, a_pad, w_bytes, weight_bufs):
    """Rough per-call VMEM estimate (weights + pipelined streams + temporaries)."""
    weights = ((d_pad * h_pad + h_pad * h_pad + 2 * h_pad * a_pad) * w_bytes
               + (2 * h_pad + 2 * a_pad) * 4) * weight_bufs
    streams = 2 * tile_rows * (d_pad * w_bytes + 2 * a_pad * 4) + 2 * tile_rows * 4
    temps = tile_rows * (2 * h_pad + 6 * a_pad) * 4
    return weights + streams + temps


def prepare_params(params, *, use_bf16=True):
    """Pad / fuse / cast the policy weights ONCE (hoisted out of the per-step path).

    Returns a dict of padded weights plus static dims, to be passed to
    gaussian_policy_forward.
    """
    D, H = params["w1"].shape
    A = params["wm"].shape[1]
    D_pad = _round_up(max(D, 128), 128)
    H_pad = _round_up(max(H, 128), 128)
    A_pad = _round_up(max(A, 128), 128)
    w_dtype = jnp.bfloat16 if use_bf16 else jnp.float32

    w1 = _pad2(params["w1"], D_pad, H_pad, w_dtype)
    b1 = _pad2(params["b1"], 1, H_pad)
    w2 = _pad2(params["w2"], H_pad, H_pad, w_dtype)
    b2 = _pad2(params["b2"], 1, H_pad)

    # fused heads: lanes [0, A_pad) -> mean, lanes [A_pad, 2*A_pad) -> log_std
    wh = jnp.zeros((H_pad, 2 * A_pad), w_dtype)
    wh = wh.at[:H, :A].set(params["wm"].astype(w_dtype))
    wh = wh.at[:H, A_pad:A_pad + A].set(params["ws"].astype(w_dtype))
    bh = jnp.zeros((1, 2 * A_pad), jnp.float32)
    bh = bh.at[:, :A].set(params["bm"])
    bh = bh.at[:, A_pad:A_pad + A].set(params["bs"])

    return dict(w1=w1, b1=b1, w2=w2, b2=b2, wh=wh, bh=bh,
                dims=(D, H, A, D_pad, H_pad, A_pad))


def _policy_kernel(a_real, a_pad, lane_pack,
                   obs_ref, w1_ref, b1_ref, w2_ref, b2_ref, wh_ref, bh_ref, eps_ref,
                   act_ref, logp_ref):
    w_dtype = w1_ref.dtype  # f32 or bf16 (MXU path only)

    # --- MLP trunk: MXU matmuls with f32 accumulation, f32 ReLU on the VPU ---
    h1 = jnp.dot(obs_ref[...], w1_ref[...],
                 preferred_element_type=jnp.float32) + b1_ref[...]
    h1 = jnp.maximum(h1, 0.0)
    h2 = jnp.dot(h1.astype(w_dtype), w2_ref[...],
                 preferred_element_type=jnp.float32) + b2_ref[...]
    h2 = jnp.maximum(h2, 0.0)

    # --- fused Gaussian heads: single (H_pad, 2*A_pad) matmul ---
    head = jnp.dot(h2.astype(w_dtype), wh_ref[...],
                   preferred_element_type=jnp.float32) + bh_ref[...]
    mean = head[:, :a_pad]
    log_std = jnp.clip(head[:, a_pad:], LOG_STD_MIN, LOG_STD_MAX)
    std = jnp.exp(log_std)

    # --- reparameterized sample (f32 elementwise) ---
    eps = eps_ref[...]
    act_ref[...] = (mean + std * eps).astype(act_ref.dtype)

    # --- Normal log-prob summed over action dims ---
    # Padded lanes have eps == 0 and log_std == 0 exactly (zero-filled weights/bias/eps),
    # so each padded lane contributes exactly -HALF_LOG_2PI: sum over every lane and add
    # a constant correction instead of masking.
    terms = -0.5 * eps * eps - log_std - HALF_LOG_2PI
    correction = (a_pad - a_real) * HALF_LOG_2PI
    if lane_pack:
        tb = terms.shape[0]
        terms3 = terms.reshape(tb // 128, 128, a_pad)       # free split of the sublane dim
        logp = jnp.sum(terms3, axis=-1) + correction         # (tb//128, 128), lane-dense
        logp_ref[...] = logp.reshape(logp_ref.shape)
    else:
        logp = jnp.sum(terms, axis=-1, keepdims=True) + correction   # (tb, 1)
        logp_ref[...] = logp


def _pallas_forward(obs_p, eps_p, prep, n_tiles, tile_rows, fast_path):
    D, H, A, D_pad, H_pad, A_pad = prep["dims"]
    w_dtype = prep["w1"].dtype
    w_bytes = jnp.dtype(w_dtype).itemsize
    B_pad = n_tiles * tile_rows

    def batch_spec(cols):
        return pl.BlockSpec((tile_rows, cols), lambda i: (i, 0))

    if fast_path:
        # constant index_map -> weights fetched once; single buffer halves their VMEM
        def const_spec(shape):
            return pl.BlockSpec(shape, lambda i: (0, 0), pipeline_mode=pl.Buffered(1))
        logp_shape = jax.ShapeDtypeStruct((n_tiles, tile_rows // 128, 128), jnp.float32)
        logp_spec = pl.BlockSpec((1, tile_rows // 128, 128), lambda i: (i, 0, 0))
        weight_bufs = 1
    else:
        def const_spec(shape):
            return pl.BlockSpec(shape, lambda i: (0, 0))
        logp_shape = jax.ShapeDtypeStruct((B_pad, 1), jnp.float32)
        logp_spec = pl.BlockSpec((tile_rows, 1), lambda i: (i, 0))
        weight_bufs = 2

    vmem_est = _vmem_bytes(tile_rows, D_pad, H_pad, A_pad, w_bytes, weight_bufs)
    vmem_limit = int(min(64 << 20, max(32 << 20, 2 * vmem_est)))

    kernel = functools.partial(_policy_kernel, A, A_pad, fast_path)

    act_p, logp_p = pl.pallas_call(
        kernel,
        out_shape=(jax.ShapeDtypeStruct((B_pad, A_pad), jnp.float32), logp_shape),
        grid=(n_tiles,),
        in_specs=[batch_spec(D_pad),
                  const_spec((D_pad, H_pad)), const_spec((1, H_pad)),
                  const_spec((H_pad, H_pad)), const_spec((1, H_pad)),
                  const_spec((H_pad, 2 * A_pad)), const_spec((1, 2 * A_pad)),
                  batch_spec(A_pad)],
        out_specs=(pl.BlockSpec((tile_rows, A_pad), lambda i: (i, 0)), logp_spec),
        compiler_params=pltpu.CompilerParams(
            dimension_semantics=("parallel",),
            vmem_limit_bytes=vmem_limit),
    )(obs_p, prep["w1"], prep["b1"], prep["w2"], prep["b2"],
      prep["wh"], prep["bh"], eps_p)

    return act_p, logp_p


def gaussian_policy_forward(obs, prepared_params, eps, *, tile_b=1024):
    """Fused stochastic policy forward.

    obs: (B, D) f32, eps: (B, A) f32 ~ N(0,1)   ->   (act (B, A) f32, log_prob (B, 1) f32)
    `prepared_params` comes from prepare_params(). `tile_b` is the target batch tile
    (sweep 512 / 1024 / 2048 for large B).
    """
    global _FAST_PATH_OK
    D, H, A, D_pad, H_pad, A_pad = prepared_params["dims"]
    w_dtype = prepared_params["w1"].dtype
    w_bytes = jnp.dtype(w_dtype).itemsize
    B = obs.shape[0]

    # Batch tiling: 128-row granularity (lane-dense logp repack) with minimal padding;
    # keep >=2 tiles when there is enough work so v7x megacore uses both TensorCores.
    n_tiles = max(1, _cdiv(B, max(128, _round_up(tile_b, 128))))
    if B >= 256:
        n_tiles = max(n_tiles, 2)
    tile_rows = _round_up(_cdiv(B, n_tiles), 128)
    # shrink the tile until the (single-buffered) VMEM budget fits
    while tile_rows > 128 and _vmem_bytes(tile_rows, D_pad, H_pad, A_pad,
                                          w_bytes, 1) > _VMEM_BUDGET:
        tile_rows -= 128
    n_tiles = _cdiv(B, tile_rows)
    if B >= 256:
        n_tiles = max(n_tiles, 2)
    B_pad = n_tiles * tile_rows

    # obs only feeds the MXU -> cast/pad in the wrapper dtype; eps stays f32 (log-prob math)
    obs_p = _pad2(obs, B_pad, D_pad, w_dtype)
    eps_p = _pad2(eps, B_pad, A_pad, jnp.float32)

    out = None
    if _FAST_PATH_OK is not False:
        try:
            out = _pallas_forward(obs_p, eps_p, prepared_params, n_tiles, tile_rows, True)
            if _FAST_PATH_OK is None:
                jax.block_until_ready(out)
            _FAST_PATH_OK = True
        except Exception:
            _FAST_PATH_OK = False
            out = None
    if out is None:
        out = _pallas_forward(obs_p, eps_p, prepared_params, n_tiles, tile_rows, False)

    act_p, logp_p = out
    act = act_p[:B, :A]
    log_prob = logp_p.reshape(B_pad, 1)[:B]
    return act, log_prob


def init_params(key, obs_dim, hidden_dim, act_dim):
    ks = jax.random.split(key, 4)

    def lin(k, fan_in, fan_out):
        scale = 1.0 / math.sqrt(fan_in)
        w = jax.random.uniform(k, (fan_in, fan_out), jnp.float32, -scale, scale)
        b = jnp.zeros((1, fan_out), jnp.float32)
        return w, b

    w1, b1 = lin(ks[0], obs_dim, hidden_dim)
    w2, b2 = lin(ks[1], hidden_dim, hidden_dim)
    wm, bm = lin(ks[2], hidden_dim, act_dim)
    ws, bs = lin(ks[3], hidden_dim, act_dim)
    return dict(w1=w1, b1=b1, w2=w2, b2=b2, wm=wm, bm=bm, ws=ws, bs=bs)


def reference_forward(obs, params, eps):
    h1 = jnp.maximum(obs @ params["w1"] + params["b1"], 0.0)
    h2 = jnp.maximum(h1 @ params["w2"] + params["b2"], 0.0)
    mean = h2 @ params["wm"] + params["bm"]
    log_std = jnp.clip(h2 @ params["ws"] + params["bs"], LOG_STD_MIN, LOG_STD_MAX)
    std = jnp.exp(log_std)
    act = mean + std * eps
    logp = -0.5 * eps * eps - log_std - HALF_LOG_2PI
    return act, jnp.sum(logp, axis=-1, keepdims=True)


if __name__ == "__main__":
    key = jax.random.PRNGKey(0)

    # --- small-shape check (f32 path, tight tolerance) ---
    B, OBS_DIM, HIDDEN, ACT_DIM = 2, 16, 32, 4
    k_obs, k_eps, k_par, k2 = jax.random.split(key, 4)
    obs = jax.random.normal(k_obs, (B, OBS_DIM), jnp.float32)
    eps = jax.random.normal(k_eps, (B, ACT_DIM), jnp.float32)
    params = init_params(k_par, OBS_DIM, HIDDEN, ACT_DIM)

    prep_f32 = prepare_params(params, use_bf16=False)
    act, log_prob = gaussian_policy_forward(obs, prep_f32, eps)
    jax.block_until_ready((act, log_prob))
    ref_act, ref_lp = reference_forward(obs, params, eps)
    assert act.shape == (B, ACT_DIM) and log_prob.shape == (B, 1)
    assert jnp.allclose(act, ref_act, atol=1e-5), "action mismatch (f32)"
    assert jnp.allclose(log_prob, ref_lp, atol=1e-5), "log_prob mismatch (f32)"

    # --- multi-tile grid check (B not a multiple of the tile, >=2 tiles for megacore) ---
    B2, OBS2, HID2, ACT2 = 300, 17, 64, 5
    ko, ke, kp = jax.random.split(k2, 3)
    obs2 = jax.random.normal(ko, (B2, OBS2), jnp.float32)
    eps2 = jax.random.normal(ke, (B2, ACT2), jnp.float32)
    params2 = init_params(kp, OBS2, HID2, ACT2)

    prep2 = prepare_params(params2, use_bf16=False)
    act2, lp2 = gaussian_policy_forward(obs2, prep2, eps2, tile_b=128)
    jax.block_until_ready((act2, lp2))
    ref_act2, ref_lp2 = reference_forward(obs2, params2, eps2)
    assert jnp.allclose(act2, ref_act2, atol=1e-4), "action mismatch (gridded)"
    assert jnp.allclose(lp2, ref_lp2, atol=1e-4), "log_prob mismatch (gridded)"

    # --- default bf16 MXU path (looser tolerance: bf16 rounding in the matmuls) ---
    prep_bf16 = prepare_params(params)   # use_bf16=True by default
    act_bf, lp_bf = gaussian_policy_forward(obs, prep_bf16, eps)
    jax.block_until_ready((act_bf, lp_bf))
    assert jnp.allclose(act_bf, ref_act, atol=1e-1, rtol=5e-2), "action mismatch (bf16)"
    assert jnp.allclose(lp_bf, ref_lp, atol=1e-1, rtol=5e-2), "log_prob mismatch (bf16)"

    print("KERNEL_OK")
</pallas_src>

<mosaic_0001>
module attributes {stable_mosaic.version = 11 : i64} {
  func.func @_policy_kernel(%arg0: i32, %arg1: memref<128x128xf32, #tpu.memory_space<vmem>>, %arg2: memref<128x128xf32, #tpu.memory_space<vmem>>, %arg3: memref<1x128xf32, #tpu.memory_space<vmem>>, %arg4: memref<128x128xf32, #tpu.memory_space<vmem>>, %arg5: memref<1x128xf32, #tpu.memory_space<vmem>>, %arg6: memref<128x256xf32, #tpu.memory_space<vmem>>, %arg7: memref<1x256xf32, #tpu.memory_space<vmem>>, %arg8: memref<128x128xf32, #tpu.memory_space<vmem>>, %arg9: memref<128x128xf32, #tpu.memory_space<vmem>>, %arg10: memref<1x1x128xf32, #tpu.memory_space<vmem>>) attributes {dimension_semantics = [#tpu.dimension_semantics<parallel>], iteration_bounds = array<i64: 1>, scalar_prefetch = 0 : i64, scratch_operands = 0 : i64, tpu.core_type = #tpu.core_type<tc>, window_params = [{transform_indices = @transform_0, window_bounds = array<i64: 128, 128>}, {pipeline_mode = #tpu.pipeline_mode<synchronous>, transform_indices = @transform_1, window_bounds = array<i64: 128, 128>}, {pipeline_mode = #tpu.pipeline_mode<synchronous>, transform_indices = @transform_2, window_bounds = array<i64: 1, 128>}, {pipeline_mode = #tpu.pipeline_mode<synchronous>, transform_indices = @transform_3, window_bounds = array<i64: 128, 128>}, {pipeline_mode = #tpu.pipeline_mode<synchronous>, transform_indices = @transform_4, window_bounds = array<i64: 1, 128>}, {pipeline_mode = #tpu.pipeline_mode<synchronous>, transform_indices = @transform_5, window_bounds = array<i64: 128, 256>}, {pipeline_mode = #tpu.pipeline_mode<synchronous>, transform_indices = @transform_6, window_bounds = array<i64: 1, 256>}, {transform_indices = @transform_7, window_bounds = array<i64: 128, 128>}, {transform_indices = @transform_8, window_bounds = array<i64: 128, 128>}, {transform_indices = @transform_9, window_bounds = array<i64: 1, 1, 128>}]} {
    %c0 = arith.constant 0 : index
    %c0_0 = arith.constant 0 : index
    %0 = vector.load %arg1[%c0, %c0_0] : memref<128x128xf32, #tpu.memory_space<vmem>>, vector<128x128xf32>
    %c0_1 = arith.constant 0 : index
    %c0_2 = arith.constant 0 : index
    %1 = vector.load %arg2[%c0_1, %c0_2] : memref<128x128xf32, #tpu.memory_space<vmem>>, vector<128x128xf32>
    %cst = arith.constant dense<0.000000e+00> : vector<128x128xf32>
    %2 = tpu.matmul %0, %1, %cst {dimension_numbers = #tpu.dot_dimension_numbers<[1], [0], [0], [1], [0, 0, 1, 1], [], []>} : vector<128x128xf32>, vector<128x128xf32>, vector<128x128xf32> -> vector<128x128xf32>
    %c0_3 = arith.constant 0 : index
    %c0_4 = arith.constant 0 : index
    %3 = vector.load %arg3[%c0_3, %c0_4] : memref<1x128xf32, #tpu.memory_space<vmem>>, vector<1x128xf32>
    %4 = vector.broadcast %3 : vector<1x128xf32> to vector<128x128xf32>
    %5 = arith.addf %2, %4 : vector<128x128xf32>
    %cst_5 = arith.constant 0.000000e+00 : f32
    %6 = vector.broadcast %cst_5 : f32 to vector<128x128xf32>
    %7 = arith.maximumf %5, %6 : vector<128x128xf32>
    %c0_6 = arith.constant 0 : index
    %c0_7 = arith.constant 0 : index
    %8 = vector.load %arg4[%c0_6, %c0_7] : memref<128x128xf32, #tpu.memory_space<vmem>>, vector<128x128xf32>
    %cst_8 = arith.constant dense<0.000000e+00> : vector<128x128xf32>
    %9 = tpu.matmul %7, %8, %cst_8 {dimension_numbers = #tpu.dot_dimension_numbers<[1], [0], [0], [1], [0, 0, 1, 1], [], []>} : vector<128x128xf32>, vector<128x128xf32>, vector<128x128xf32> -> vector<128x128xf32>
    %c0_9 = arith.constant 0 : index
    %c0_10 = arith.constant 0 : index
    %10 = vector.load %arg5[%c0_9, %c0_10] : memref<1x128xf32, #tpu.memory_space<vmem>>, vector<1x128xf32>
    %11 = vector.broadcast %10 : vector<1x128xf32> to vector<128x128xf32>
    %12 = arith.addf %9, %11 : vector<128x128xf32>
    %cst_11 = arith.constant 0.000000e+00 : f32
    %13 = vector.broadcast %cst_11 : f32 to vector<128x128xf32>
    %14 = arith.maximumf %12, %13 : vector<128x128xf32>
    %c0_12 = arith.constant 0 : index
    %c0_13 = arith.constant 0 : index
    %15 = vector.load %arg6[%c0_12, %c0_13] : memref<128x256xf32, #tpu.memory_space<vmem>>, vector<128x256xf32>
    %cst_14 = arith.constant dense<0.000000e+00> : vector<128x256xf32>
    %16 = tpu.matmul %14, %15, %cst_14 {dimension_numbers = #tpu.dot_dimension_numbers<[1], [0], [0], [1], [0, 0, 1, 1], [], []>} : vector<128x128xf32>, vector<128x256xf32>, vector<128x256xf32> -> vector<128x256xf32>
    %c0_15 = arith.constant 0 : index
    %c0_16 = arith.constant 0 : index
    %17 = vector.load %arg7[%c0_15, %c0_16] : memref<1x256xf32, #tpu.memory_space<vmem>>, vector<1x256xf32>
    %18 = vector.broadcast %17 : vector<1x256xf32> to vector<128x256xf32>
    %19 = arith.addf %16, %18 : vector<128x256xf32>
    %20 = vector.extract_strided_slice %19 {offsets = [0, 0], sizes = [128, 128], strides = [1, 1]} : vector<128x256xf32> to vector<128x128xf32>
    %21 = vector.extract_strided_slice %19 {offsets = [0, 128], sizes = [128, 128], strides = [1, 1]} : vector<128x256xf32> to vector<128x128xf32>
    %cst_17 = arith.constant -2.000000e+01 : f32
    %cst_18 = arith.constant 2.000000e+00 : f32
    %22 = vector.broadcast %cst_17 : f32 to vector<128x128xf32>
    %23 = arith.maximumf %22, %21 : vector<128x128xf32>
    %24 = vector.broadcast %cst_18 : f32 to vector<128x128xf32>
    %25 = arith.minimumf %24, %23 : vector<128x128xf32>
    %26 = math.exp %25 : vector<128x128xf32>
    %c0_19 = arith.constant 0 : index
    %c0_20 = arith.constant 0 : index
    %27 = vector.load %arg8[%c0_19, %c0_20] : memref<128x128xf32, #tpu.memory_space<vmem>>, vector<128x128xf32>
    %28 = arith.mulf %26, %27 : vector<128x128xf32>
    %29 = arith.addf %20, %28 : vector<128x128xf32>
    %c0_21 = arith.constant 0 : index
    %c0_22 = arith.constant 0 : index
    %30 = vector.load %arg9[%c0_21, %c0_22] : memref<128x128xf32, #tpu.memory_space<vmem>>, vector<128x128xf32>
    tpu.vector_store %arg9[%c0_21, %c0_22], %29 {strides = array<i32>} : memref<128x128xf32, #tpu.memory_space<vmem>>, vector<128x128xf32>,
    %cst_23 = arith.constant -5.000000e-01 : f32
    %31 = vector.broadcast %cst_23 : f32 to vector<128x128xf32>
    %32 = arith.mulf %31, %27 : vector<128x128xf32>
    %33 = arith.mulf %32, %27 : vector<128x128xf32>
    %34 = arith.subf %33, %25 : vector<128x128xf32>
    %cst_24 = arith.constant 0.918938517 : f32
    %35 = vector.broadcast %cst_24 : f32 to vector<128x128xf32>
    %36 = arith.subf %34, %35 : vector<128x128xf32>
    %37 = vector.shape_cast %36 : vector<128x128xf32> to vector<1x128x128xf32>
    %cst_25 = arith.constant dense<0.000000e+00> : vector<1x128xf32>
    %38 = vector.multi_reduction <add>, %37, %cst_25 [2] : vector<1x128x128xf32> to vector<1x128xf32>
    %cst_26 = arith.constant 113.94838 : f32
    %39 = vector.broadcast %cst_26 : f32 to vector<1x128xf32>
    %40 = arith.addf %38, %39 : vector<1x128xf32>
    %41 = vector.shape_cast %40 : vector<1x128xf32> to vector<1x1x128xf32>
    %c0_27 = arith.constant 0 : index
    %c0_28 = arith.constant 0 : index
    %c0_29 = arith.constant 0 : index
    %42 = vector.load %arg10[%c0_27, %c0_28, %c0_29] : memref<1x1x128xf32, #tpu.memory_space<vmem>>, vector<1x1x128xf32>
    tpu.vector_store %arg10[%c0_27, %c0_28, %c0_29], %41 {strides = array<i32>} : memref<1x1x128xf32, #tpu.memory_space<vmem>>, vector<1x1x128xf32>,
    return
  }
  func.func @transform_0(%arg0: i32) -> (i32, i32) {
    %c0_i32 = arith.constant 0 : i32
    %c0_i32_0 = arith.constant 0 : i32
    return %arg0, %c0_i32 : i32, i32
  }
  func.func @transform_1(%arg0: i32) -> (i32, i32) {
    %c0_i32 = arith.constant 0 : i32
    %c0_i32_0 = arith.constant 0 : i32
    %c0_i32_1 = arith.constant 0 : i32
    return %c0_i32, %c0_i32_0 : i32, i32
  }
  func.func @transform_2(%arg0: i32) -> (i32, i32) {
    %c0_i32 = arith.constant 0 : i32
    %c0_i32_0 = arith.constant 0 : i32
    %c0_i32_1 = arith.constant 0 : i32
    return %c0_i32, %c0_i32_0 : i32, i32
  }
  func.func @transform_3(%arg0: i32) -> (i32, i32) {
    %c0_i32 = arith.constant 0 : i32
    %c0_i32_0 = arith.constant 0 : i32
    %c0_i32_1 = arith.constant 0 : i32
    return %c0_i32, %c0_i32_0 : i32, i32
  }
  func.func @transform_4(%arg0: i32) -> (i32, i32) {
    %c0_i32 = arith.constant 0 : i32
    %c0_i32_0 = arith.constant 0 : i32
    %c0_i32_1 = arith.constant 0 : i32
    return %c0_i32, %c0_i32_0 : i32, i32
  }
  func.func @transform_5(%arg0: i32) -> (i32, i32) {
    %c0_i32 = arith.constant 0 : i32
    %c0_i32_0 = arith.constant 0 : i32
    %c0_i32_1 = arith.constant 0 : i32
    return %c0_i32, %c0_i32_0 : i32, i32
  }
  func.func @transform_6(%arg0: i32) -> (i32, i32) {
    %c0_i32 = arith.constant 0 : i32
    %c0_i32_0 = arith.constant 0 : i32
    %c0_i32_1 = arith.constant 0 : i32
    return %c0_i32, %c0_i32_0 : i32, i32
  }
  func.func @transform_7(%arg0: i32) -> (i32, i32) {
    %c0_i32 = arith.constant 0 : i32
    %c0_i32_0 = arith.constant 0 : i32
    return %arg0, %c0_i32 : i32, i32
  }
  func.func @transform_8(%arg0: i32) -> (i32, i32) {
    %c0_i32 = arith.constant 0 : i32
    %c0_i32_0 = arith.constant 0 : i32
    return %arg0, %c0_i32 : i32, i32
  }
  func.func @transform_9(%arg0: i32) -> (i32, i32, i32) {
    %c0_i32 = arith.constant 0 : i32
    %c0_i32_0 = arith.constant 0 : i32
    %c0_i32_1 = arith.constant 0 : i32
    return %arg0, %c0_i32, %c0_i32_0 : i32, i32, i32
  }
}

module attributes {stable_mosaic.version = 11 : i64} {
  func.func @_policy_kernel(%arg0: i32, %arg1: memref<128x128xf32, #tpu.memory_space<vmem>>, %arg2: memref<128x128xf32, #tpu.memory_space<vmem>>, %arg3: memref<1x128xf32, #tpu.memory_space<vmem>>, %arg4: memref<128x128xf32, #tpu.memory_space<vmem>>, %arg5: memref<1x128xf32, #tpu.memory_space<vmem>>, %arg6: memref<128x256xf32, #tpu.memory_space<vmem>>, %arg7: memref<1x256xf32, #tpu.memory_space<vmem>>, %arg8: memref<128x128xf32, #tpu.memory_space<vmem>>, %arg9: memref<128x128xf32, #tpu.memory_space<vmem>>, %arg10: memref<128x1xf32, #tpu.memory_space<vmem>>) attributes {dimension_semantics = [#tpu.dimension_semantics<parallel>], iteration_bounds = array<i64: 1>, scalar_prefetch = 0 : i64, scratch_operands = 0 : i64, tpu.core_type = #tpu.core_type<tc>, window_params = [{transform_indices = @transform_0, window_bounds = array<i64: 128, 128>}, {pipeline_mode = #tpu.pipeline_mode<synchronous>, transform_indices = @transform_1, window_bounds = array<i64: 128, 128>}, {pipeline_mode = #tpu.pipeline_mode<synchronous>, transform_indices = @transform_2, window_bounds = array<i64: 1, 128>}, {pipeline_mode = #tpu.pipeline_mode<synchronous>, transform_indices = @transform_3, window_bounds = array<i64: 128, 128>}, {pipeline_mode = #tpu.pipeline_mode<synchronous>, transform_indices = @transform_4, window_bounds = array<i64: 1, 128>}, {pipeline_mode = #tpu.pipeline_mode<synchronous>, transform_indices = @transform_5, window_bounds = array<i64: 128, 256>}, {pipeline_mode = #tpu.pipeline_mode<synchronous>, transform_indices = @transform_6, window_bounds = array<i64: 1, 256>}, {transform_indices = @transform_7, window_bounds = array<i64: 128, 128>}, {transform_indices = @transform_8, window_bounds = array<i64: 128, 128>}, {transform_indices = @transform_9, window_bounds = array<i64: 128, 1>}]} {
    %c0 = arith.constant 0 : index
    %c0_0 = arith.constant 0 : index
    %0 = vector.load %arg1[%c0, %c0_0] : memref<128x128xf32, #tpu.memory_space<vmem>>, vector<128x128xf32>
    %c0_1 = arith.constant 0 : index
    %c0_2 = arith.constant 0 : index
    %1 = vector.load %arg2[%c0_1, %c0_2] : memref<128x128xf32, #tpu.memory_space<vmem>>, vector<128x128xf32>
    %cst = arith.constant dense<0.000000e+00> : vector<128x128xf32>
    %2 = tpu.matmul %0, %1, %cst {dimension_numbers = #tpu.dot_dimension_numbers<[1], [0], [0], [1], [0, 0, 1, 1], [], []>} : vector<128x128xf32>, vector<128x128xf32>, vector<128x128xf32> -> vector<128x128xf32>
    %c0_3 = arith.constant 0 : index
    %c0_4 = arith.constant 0 : index
    %3 = vector.load %arg3[%c0_3, %c0_4] : memref<1x128xf32, #tpu.memory_space<vmem>>, vector<1x128xf32>
    %4 = vector.broadcast %3 : vector<1x128xf32> to vector<128x128xf32>
    %5 = arith.addf %2, %4 : vector<128x128xf32>
    %cst_5 = arith.constant 0.000000e+00 : f32
    %6 = vector.broadcast %cst_5 : f32 to vector<128x128xf32>
    %7 = arith.maximumf %5, %6 : vector<128x128xf32>
    %c0_6 = arith.constant 0 : index
    %c0_7 = arith.constant 0 : index
    %8 = vector.load %arg4[%c0_6, %c0_7] : memref<128x128xf32, #tpu.memory_space<vmem>>, vector<128x128xf32>
    %cst_8 = arith.constant dense<0.000000e+00> : vector<128x128xf32>
    %9 = tpu.matmul %7, %8, %cst_8 {dimension_numbers = #tpu.dot_dimension_numbers<[1], [0], [0], [1], [0, 0, 1, 1], [], []>} : vector<128x128xf32>, vector<128x128xf32>, vector<128x128xf32> -> vector<128x128xf32>
    %c0_9 = arith.constant 0 : index
    %c0_10 = arith.constant 0 : index
    %10 = vector.load %arg5[%c0_9, %c0_10] : memref<1x128xf32, #tpu.memory_space<vmem>>, vector<1x128xf32>
    %11 = vector.broadcast %10 : vector<1x128xf32> to vector<128x128xf32>
    %12 = arith.addf %9, %11 : vector<128x128xf32>
    %cst_11 = arith.constant 0.000000e+00 : f32
    %13 = vector.broadcast %cst_11 : f32 to vector<128x128xf32>
    %14 = arith.maximumf %12, %13 : vector<128x128xf32>
    %c0_12 = arith.constant 0 : index
    %c0_13 = arith.constant 0 : index
    %15 = vector.load %arg6[%c0_12, %c0_13] : memref<128x256xf32, #tpu.memory_space<vmem>>, vector<128x256xf32>
    %cst_14 = arith.constant dense<0.000000e+00> : vector<128x256xf32>
    %16 = tpu.matmul %14, %15, %cst_14 {dimension_numbers = #tpu.dot_dimension_numbers<[1], [0], [0], [1], [0, 0, 1, 1], [], []>} : vector<128x128xf32>, vector<128x256xf32>, vector<128x256xf32> -> vector<128x256xf32>
    %c0_15 = arith.constant 0 : index
    %c0_16 = arith.constant 0 : index
    %17 = vector.load %arg7[%c0_15, %c0_16] : memref<1x256xf32, #tpu.memory_space<vmem>>, vector<1x256xf32>
    %18 = vector.broadcast %17 : vector<1x256xf32> to vector<128x256xf32>
    %19 = arith.addf %16, %18 : vector<128x256xf32>
    %20 = vector.extract_strided_slice %19 {offsets = [0, 0], sizes = [128, 128], strides = [1, 1]} : vector<128x256xf32> to vector<128x128xf32>
    %21 = vector.extract_strided_slice %19 {offsets = [0, 128], sizes = [128, 128], strides = [1, 1]} : vector<128x256xf32> to vector<128x128xf32>
    %cst_17 = arith.constant -2.000000e+01 : f32
    %cst_18 = arith.constant 2.000000e+00 : f32
    %22 = vector.broadcast %cst_17 : f32 to vector<128x128xf32>
    %23 = arith.maximumf %22, %21 : vector<128x128xf32>
    %24 = vector.broadcast %cst_18 : f32 to vector<128x128xf32>
    %25 = arith.minimumf %24, %23 : vector<128x128xf32>
    %26 = math.exp %25 : vector<128x128xf32>
    %c0_19 = arith.constant 0 : index
    %c0_20 = arith.constant 0 : index
    %27 = vector.load %arg8[%c0_19, %c0_20] : memref<128x128xf32, #tpu.memory_space<vmem>>, vector<128x128xf32>
    %28 = arith.mulf %26, %27 : vector<128x128xf32>
    %29 = arith.addf %20, %28 : vector<128x128xf32>
    %c0_21 = arith.constant 0 : index
    %c0_22 = arith.constant 0 : index
    %30 = vector.load %arg9[%c0_21, %c0_22] : memref<128x128xf32, #tpu.memory_space<vmem>>, vector<128x128xf32>
    tpu.vector_store %arg9[%c0_21, %c0_22], %29 {strides = array<i32>} : memref<128x128xf32, #tpu.memory_space<vmem>>, vector<128x128xf32>,
    %cst_23 = arith.constant -5.000000e-01 : f32
    %31 = vector.broadcast %cst_23 : f32 to vector<128x128xf32>
    %32 = arith.mulf %31, %27 : vector<128x128xf32>
    %33 = arith.mulf %32, %27 : vector<128x128xf32>
    %34 = arith.subf %33, %25 : vector<128x128xf32>
    %cst_24 = arith.constant 0.918938517 : f32
    %35 = vector.broadcast %cst_24 : f32 to vector<128x128xf32>
    %36 = arith.subf %34, %35 : vector<128x128xf32>
    %cst_25 = arith.constant dense<0.000000e+00> : vector<128xf32>
    %37 = vector.multi_reduction <add>, %36, %cst_25 [1] : vector<128x128xf32> to vector<128xf32>
    %38 = vector.shape_cast %37 : vector<128xf32> to vector<128x1xf32>
    %cst_26 = arith.constant 113.94838 : f32
    %39 = vector.broadcast %cst_26 : f32 to vector<128x1xf32>
    %40 = arith.addf %38, %39 : vector<128x1xf32>
    %c0_27 = arith.constant 0 : index
    %c0_28 = arith.constant 0 : index
    %41 = vector.load %arg10[%c0_27, %c0_28] : memref<128x1xf32, #tpu.memory_space<vmem>>, vector<128x1xf32>
    tpu.vector_store %arg10[%c0_27, %c0_28], %40 {strides = array<i32>} : memref<128x1xf32, #tpu.memory_space<vmem>>, vector<128x1xf32>,
    return
  }
  func.func @transform_0(%arg0: i32) -> (i32, i32) {
    %c0_i32 = arith.constant 0 : i32
    %c0_i32_0 = arith.constant 0 : i32
    return %arg0, %c0_i32 : i32, i32
  }
  func.func @transform_1(%arg0: i32) -> (i32, i32) {
    %c0_i32 = arith.constant 0 : i32
    %c0_i32_0 = arith.constant 0 : i32
    %c0_i32_1 = arith.constant 0 : i32
    return %c0_i32, %c0_i32_0 : i32, i32
  }
  func.func @transform_2(%arg0: i32) -> (i32, i32) {
    %c0_i32 = arith.constant 0 : i32
    %c0_i32_0 = arith.constant 0 : i32
    %c0_i32_1 = arith.constant 0 : i32
    return %c0_i32, %c0_i32_0 : i32, i32
  }
  func.func @transform_3(%arg0: i32) -> (i32, i32) {
    %c0_i32 = arith.constant 0 : i32
    %c0_i32_0 = arith.constant 0 : i32
    %c0_i32_1 = arith.constant 0 : i32
    return %c0_i32, %c0_i32_0 : i32, i32
  }
  func.func @transform_4(%arg0: i32) -> (i32, i32) {
    %c0_i32 = arith.constant 0 : i32
    %c0_i32_0 = arith.constant 0 : i32
    %c0_i32_1 = arith.constant 0 : i32
    return %c0_i32, %c0_i32_0 : i32, i32
  }
  func.func @transform_5(%arg0: i32) -> (i32, i32) {
    %c0_i32 = arith.constant 0 : i32
    %c0_i32_0 = arith.constant 0 : i32
    %c0_i32_1 = arith.constant 0 : i32
    return %c0_i32, %c0_i32_0 : i32, i32
  }
  func.func @transform_6(%arg0: i32) -> (i32, i32) {
    %c0_i32 = arith.constant 0 : i32
    %c0_i32_0 = arith.constant 0 : i32
    %c0_i32_1 = arith.constant 0 : i32
    return %c0_i32, %c0_i32_0 : i32, i32
  }
  func.func @transform_7(%arg0: i32) -> (i32, i32) {
    %c0_i32 = arith.constant 0 : i32
    %c0_i32_0 = arith.constant 0 : i32
    return %arg0, %c0_i32 : i32, i32
  }
  func.func @transform_8(%arg0: i32) -> (i32, i32) {
    %c0_i32 = arith.constant 0 : i32
    %c0_i32_0 = arith.constant 0 : i32
    return %arg0, %c0_i32 : i32, i32
  }
  func.func @transform_9(%arg0: i32) -> (i32, i32) {
    %c0_i32 = arith.constant 0 : i32
    %c0_i32_0 = arith.constant 0 : i32
    return %arg0, %c0_i32 : i32, i32
  }
}

</mosaic_0001>

<bundles_post_ra>
// kernel: tpu_custom_call.1
= control target key start
LH: loop header
LB: loop body
LE: loop exit
PB: predicated region body
PF: predicated region fallthrough
CT: control target
= control target key end

     0   :  { %15 = vsyncpa [#allocation3], 0  ;;  %s1830_s0 = inlined_call_operand.hbm [shape: f32[128,128], index: 0, kind: input, shape index: {}]   ;;  %s1831_s1 = inlined_call_operand.hbm [shape: f32[128,128], index: 1, kind: input, shape index: {}]   ;;  %s1832_s2 = inlined_call_operand.vmem [shape: f32[1,128], index: 2, kind: input, shape index: {}]   ;;  %s1833_s3 = inlined_call_operand.hbm [shape: f32[128,128], index: 3, kind: input, shape index: {}]   ;;  %s1834_s4 = inlined_call_operand.vmem [shape: f32[1,128], index: 4, kind: input, shape index: {}]   ;;  %s1835_s5 = inlined_call_operand.hbm [shape: f32[128,256], index: 5, kind: input, shape index: {}]   ;;  %s1836_s6 = inlined_call_operand.vmem [shape: f32[1,256], index: 6, kind: input, shape index: {}]   ;;  %s1837_s7 = inlined_call_operand.hbm [shape: f32[128,128], index: 7, kind: input, shape index: {}]   ;;  %s1838_s8 = inlined_call_operand.hbm [shape: f32[128,128], index: 8, kind: output, shape index: {0}]   ;;  %s1839_s9 = inlined_call_operand.hbm [shape: f32[1,1,128], index: 9, kind: output, shape index: {1}]  }
   0x1   :  { %16 = vsyncpa [#allocation6], 0 }
   0x2   :  { %17 = vsyncpa [#allocation9], 0 }
   0x3   :  { %18 = vsyncpa [#allocation4], 0 }
   0x4   :  { %19 = vsyncpa [#allocation13], 0  ;;  %s1480_s30 = smov [#allocation5]   ;;  %s1481_s11 = smov [#allocation8]  }
   0x5   :  { %s37_s10 = sshll.u32 %s1480_s30, 4  ;;  %s65_s12 = sshll.u32 %s1481_s11, 4  ;;  %s38_s10 = int_to_ptr.vmem [resolvable:$true] %s37_s10  ;;  %s66_s12 = int_to_ptr.vmem [resolvable:$true] %s65_s12 }
   0x6   :  { %s1338_s13 = scalar_lea.vmem %s38_s10, 2048  ;;  %p1343_p1 = scmp.lt.s32.totalorder %s38_s10, %s38_s10 }
   0x7   :  { %p1339_p0 = scmp.ne.s32.totalorder %s38_s10, %s1338_s13  ;;  %p1344_p2 = scmp.lt.s32.totalorder %s1338_s13, %s1338_s13 }
   0x9   :  { %p1345_p3 = por %p1344_p2, %p1343_p1 }
   0xb   :  { %p1346_p4 = pnand %p1345_p3, %p1339_p0 }
   0xd   :  { %1349 = shalt.err (!%p1346_p4)
}
   0xe   :  { %s1482_s14 = smov 128   ;;  %s1483_s15 = smov 8  }
   0xf   :  { %43 = dma.hbm_to_vmem [thread:$0]  %s1831_s1, 2048, %s38_s10, [#allocation6], %s1482_s14, %s1482_s14, %s1483_s15  }
  0x10   :  { %s1358_s18 = scalar_lea.vmem %s66_s12, 4096  ;;  %p1363_p6 = scmp.lt.s32.totalorder %s66_s12, %s66_s12 }
  0x11   :  { %p1359_p5 = scmp.ne.s32.totalorder %s66_s12, %s1358_s18  ;;  %p1364_p7 = scmp.lt.s32.totalorder %s1358_s18, %s1358_s18 }
  0x13   :  { %p1365_p8 = por %p1364_p7, %p1363_p6 }
  0x15   :  { %p1366_p9 = pnand %p1365_p8, %p1359_p5 }
  0x17   :  { %1369 = shalt.err (!%p1366_p9)
}
  0x18   :  { %s1484_s19 = smov 256   ;;  %s1485_s20 = smov 16  }
  0x19   :  { %71 = dma.hbm_to_vmem [thread:$0]  %s1835_s5, 4096, %s66_s12, [#allocation9], %s1484_s19, %s1484_s19, %s1485_s20  }
  0x1a   :  { %s1486_s23 = smov [#allocation2]   ;;  %s1487_s25 = smov [#allocation7]  }
  0x1b   :  { %s25_s24 = sshll.u32 %s1486_s23, 4  ;;  %s51_s26 = sshll.u32 %s1487_s25, 4  ;;  %s26_s24 = int_to_ptr.vmem [resolvable:$true] %s25_s24  ;;  %s52_s26 = int_to_ptr.vmem [resolvable:$true] %s51_s26 }
  0x1c   :  { %s1378_s1 = scalar_lea.vmem %s26_s24, 2048  ;;  %p1383_p11 = scmp.lt.s32.totalorder %s26_s24, %s26_s24 }
  0x1d   :  { %p1379_p10 = scmp.ne.s32.totalorder %s26_s24, %s1378_s1  ;;  %p1384_p12 = scmp.lt.s32.totalorder %s1378_s1, %s1378_s1 }
  0x1f   :  { %p1385_p13 = por %p1384_p12, %p1383_p11 }
  0x21   :  { %p1386_p0 = pnand %p1385_p13, %p1379_p10 }
  0x23   :  { %1389 = shalt.err (!%p1386_p0)
}
  0x24   :  { %31 = dma.hbm_to_vmem [thread:$0]  %s1830_s0, 2048, %s26_s24, [#allocation3], %s1482_s14, %s1482_s14, %s1483_s15  }
  0x25   :  { %s1398_s5 = scalar_lea.vmem %s52_s26, 2048  ;;  %p1403_p2 = scmp.lt.s32.totalorder %s52_s26, %s52_s26 }
  0x26   :  { %p1399_p1 = scmp.ne.s32.totalorder %s52_s26, %s1398_s5  ;;  %p1404_p3 = scmp.lt.s32.totalorder %s1398_s5, %s1398_s5 }
  0x28   :  { %p1405_p4 = por %p1404_p3, %p1403_p2 }
  0x2a   :  { %p1406_p5 = pnand %p1405_p4, %p1399_p1 }
  0x2c   :  { %1409 = shalt.err (!%p1406_p5)
}
  0x2d   :  { %57 = dma.hbm_to_vmem [thread:$0]  %s1833_s3, 2048, %s52_s26, [#allocation6], %s1482_s14, %s1482_s14, %s1483_s15  }
  0x2e   :  { %s1488_s10 = smov [#allocation10]  }
  0x2f   :  { %s79_s11 = sshll.u32 %s1488_s10, 4  ;;  %s80_s11 = int_to_ptr.vmem [resolvable:$true] %s79_s11 }
  0x30   :  { %s1418_s12 = scalar_lea.vmem %s80_s11, 2048  ;;  %p1423_p7 = scmp.lt.s32.totalorder %s80_s11, %s80_s11 }
  0x31   :  { %p1419_p6 = scmp.ne.s32.totalorder %s80_s11, %s1418_s12  ;;  %p1424_p8 = scmp.lt.s32.totalorder %s1418_s12, %s1418_s12 }
  0x33   :  { %p1425_p9 = por %p1424_p8, %p1423_p7 }
  0x35   :  { %p1426_p10 = pnand %p1425_p9, %p1419_p6 }
  0x37   :  { %1429 = shalt.err (!%p1426_p10)
}
  0x38   :  { %85 = dma.hbm_to_vmem [thread:$0]  %s1837_s7, 2048, %s80_s11, [#allocation9], %s1482_s14, %s1482_s14, %s1483_s15  }
  0x39   :  { %1470 = dma.done.wait [#allocation3], 2048  }
  0x3a   :  { %1471 = vsyncadd [#allocation3], 4294965248 }
  0x3b   :  { %1472 = dma.done.wait [#allocation6], 4096  }
  0x3c   :  { %1473 = vsyncadd [#allocation6], 4294963200 }
  0x3d   :  { %1474 = dma.done.wait [#allocation9], 6144  }
  0x3e   :  { %1475 = vsyncadd [#allocation9], 4294961152  ;;  %v132_v0 = vld [vmem:[#allocation5 + $0x78] sm:$0xff]  ;;  %v131_v1 = vld [vmem:[#allocation5 + $0x70] sm:$0xff] }
  0x3f   :  { %1174 = vmatprep.subr.mxu1 %v132_v0  ;;  %v130_v2 = vld [vmem:[#allocation5 + $0x68] sm:$0xff]  ;;  %v129_v3 = vld [vmem:[#allocation5 + $0x60] sm:$0xff]  ;;  %v128_v5 = vld [vmem:[#allocation5 + $0x58] sm:$0xff] }
  0x40   :  { %1175 = vmatpush3.msra.mxu1 %v132_v0  ;;  %v101_v4 = vld [vmem:[#allocation2] sm:$0xff]  ;;  %v127_v6 = vld [vmem:[#allocation5 + $0x50] sm:$0xff]  ;;  %v126_v7 = vld [vmem:[#allocation5 + $0x48] sm:$0xff] }
  0x41   :  { %1176 = vmatprep.subr.mxu1 %v131_v1  ;;  %1206 = vmatprep.mubr.f32.mxu1 %v101_v4  ;;  %v125_v8 = vld [vmem:[#allocation5 + $0x40] sm:$0xff]  ;;  %v124_v9 = vld [vmem:[#allocation5 + $0x38] sm:$0xff]  ;;  %v123_v10 = vld [vmem:[#allocation5 + $0x30] sm:$0xff] }
  0x42   :  { %1177 = vmatpush3.msra.mxu1 %v131_v1  ;;  %v122_v11 = vld [vmem:[#allocation5 + $0x28] sm:$0xff]  ;;  %v121_v12 = vld [vmem:[#allocation5 + $0x20] sm:$0xff]  ;;  %v120_v13 = vld [vmem:[#allocation5 + $0x18] sm:$0xff] }
  0x43   :  { %1178 = vmatprep.subr.mxu1 %v130_v2  ;;  %v119_v14 = vld [vmem:[#allocation5 + $0x10] sm:$0xff]  ;;  %v118_v15 = vld [vmem:[#allocation5 + $0x8] sm:$0xff]  ;;  %v117_v16 = vld [vmem:[#allocation5] sm:$0xff] }
  0x44   :  { %1179 = vmatpush3.msra.mxu1 %v130_v2  ;;  %v102_v17 = vld [vmem:[#allocation2 + $0x8] sm:$0xff]  ;;  %v316_v18 = vld [vmem:[#allocation7 + $0x78] sm:$0xff]  ;;  %v103_v19 = vld [vmem:[#allocation2 + $0x10] sm:$0xff] }
  0x45   :  { %1180 = vmatprep.subr.mxu1 %v129_v3  ;;  %v315_v20 = vld [vmem:[#allocation7 + $0x70] sm:$0xff]  ;;  %v104_v21 = vld [vmem:[#allocation2 + $0x18] sm:$0xff]  ;;  %v314_v22 = vld [vmem:[#allocation7 + $0x68] sm:$0xff] }
  0x46   :  { %1181 = vmatpush3.msra.mxu1 %v129_v3  ;;  %v105_v23 = vld [vmem:[#allocation2 + $0x20] sm:$0xff]  ;;  %v106_v25 = vld [vmem:[#allocation2 + $0x28] sm:$0xff]  ;;  %v312_v26 = vld [vmem:[#allocation7 + $0x58] sm:$0xff] }
  0x47   :  { %1182 = vmatprep.subr.mxu1 %v128_v5  ;;  %v313_v24 = vld [vmem:[#allocation7 + $0x60] sm:$0xff]  ;;  %v107_v27 = vld [vmem:[#allocation2 + $0x30] sm:$0xff]  ;;  %v108_v29 = vld [vmem:[#allocation2 + $0x38] sm:$0xff] }
  0x48   :  { %1183 = vmatpush3.msra.mxu1 %v128_v5  ;;  %v311_v28 = vld [vmem:[#allocation7 + $0x50] sm:$0xff]  ;;  %v310_v30 = vld [vmem:[#allocation7 + $0x48] sm:$0xff]  ;;  %v109_v31 = vld [vmem:[#allocation2 + $0x40] sm:$0xff] }
  0x49   :  { %1184 = vmatprep.subr.mxu1 %v127_v6  ;;  %v309_v32 = vld [vmem:[#allocation7 + $0x40] sm:$0xff]  ;;  %v110_v33 = vld [vmem:[#allocation2 + $0x48] sm:$0xff]  ;;  %v308_v34 = vld [vmem:[#allocation7 + $0x38] sm:$0xff] }
  0x4a   :  { %1185 = vmatpush3.msra.mxu1 %v127_v6  ;;  %v111_v35 = vld [vmem:[#allocation2 + $0x50] sm:$0xff]  ;;  %v112_v37 = vld [vmem:[#allocation2 + $0x58] sm:$0xff]  ;;  %v306_v38 = vld [vmem:[#allocation7 + $0x28] sm:$0xff] }
  0x4b   :  { %1186 = vmatprep.subr.mxu1 %v126_v7  ;;  %v307_v36 = vld [vmem:[#allocation7 + $0x30] sm:$0xff]  ;;  %v113_v39 = vld [vmem:[#allocation2 + $0x60] sm:$0xff]  ;;  %v114_v41 = vld [vmem:[#allocation2 + $0x68] sm:$0xff] }
  0x4c   :  { %1187 = vmatpush3.msra.mxu1 %v126_v7  ;;  %v305_v40 = vld [vmem:[#allocation7 + $0x20] sm:$0xff]  ;;  %v304_v42 = vld [vmem:[#allocation7 + $0x18] sm:$0xff]  ;;  %v115_v43 = vld [vmem:[#allocation2 + $0x70] sm:$0xff] }
  0x4d   :  { %1188 = vmatprep.subr.mxu1 %v125_v8  ;;  %v116_v44 = vld [vmem:[#allocation2 + $0x78] sm:$0xff]  ;;  %v303_v45 = vld [vmem:[#allocation7 + $0x10] sm:$0xff]  ;;  %v302_v46 = vld [vmem:[#allocation7 + $0x8] sm:$0xff] }
  0x4e   :  { %1189 = vmatpush3.msra.mxu1 %v125_v8  ;;  %v301_v47 = vld [vmem:[#allocation7] sm:$0xff]  ;;  %v516_v48 = vld [vmem:[#allocation8 + $0xf8] sm:$0xff]  ;;  %v515_v49 = vld [vmem:[#allocation8 + $0xf0] sm:$0xff] }
  0x4f   :  { %1190 = vmatprep.subr.mxu1 %v124_v9  ;;  %v514_v50 = vld [vmem:[#allocation8 + $0xe8] sm:$0xff]  ;;  %529 = vmatprep.subr.mxu0 %v516_v48  ;;  %v513_v51 = vld [vmem:[#allocation8 + $0xe0] sm:$0xff]  ;;  %v512_v52 = vld [vmem:[#allocation8 + $0xd8] sm:$0xff] }
  0x50   :  { %1191 = vmatpush3.msra.mxu1 %v124_v9  ;;  %530 = vmatpush1.msra.mxu0 %v515_v49  ;;  %v511_v53 = vld [vmem:[#allocation8 + $0xd0] sm:$0xff]  ;;  %v510_v54 = vld [vmem:[#allocation8 + $0xc8] sm:$0xff]  ;;  %v509_v55 = vld [vmem:[#allocation8 + $0xc0] sm:$0xff] }
  0x51   :  { %1192 = vmatprep.subr.mxu1 %v123_v10  ;;  %531 = vmatprep.subr.mxu0 %v514_v50  ;;  %v508_v56 = vld [vmem:[#allocation8 + $0xb8] sm:$0xff]  ;;  %v507_v57 = vld [vmem:[#allocation8 + $0xb0] sm:$0xff]  ;;  %v506_v58 = vld [vmem:[#allocation8 + $0xa8] sm:$0xff] }
  0x52   :  { %1193 = vmatpush3.msra.mxu1 %v123_v10  ;;  %532 = vmatpush1.msra.mxu0 %v513_v51  ;;  %v505_v59 = vld [vmem:[#allocation8 + $0xa0] sm:$0xff]  ;;  %v504_v60 = vld [vmem:[#allocation8 + $0x98] sm:$0xff]  ;;  %v503_v61 = vld [vmem:[#allocation8 + $0x90] sm:$0xff] }
  0x53   :  { %1194 = vmatprep.subr.mxu1 %v122_v11  ;;  %533 = vmatprep.subr.mxu0 %v512_v52  ;;  %v502_v62 = vld [vmem:[#allocation8 + $0x88] sm:$0xff]  ;;  %v501_v63 = vld [vmem:[#allocation8 + $0x80] sm:$0xff]  ;;  %v500_v0 = vld [vmem:[#allocation8 + $0x78] sm:$0xff] }
  0x54   :  { %1195 = vmatpush3.msra.mxu1 %v122_v11  ;;  %534 = vmatpush1.msra.mxu0 %v511_v53  ;;  %v499_v1 = vld [vmem:[#allocation8 + $0x70] sm:$0xff]  ;;  %v498_v2 = vld [vmem:[#allocation8 + $0x68] sm:$0xff]  ;;  %v497_v3 = vld [vmem:[#allocation8 + $0x60] sm:$0xff] }
  0x55   :  { %1196 = vmatprep.subr.mxu1 %v121_v12  ;;  %535 = vmatprep.subr.mxu0 %v510_v54  ;;  %v496_v4 = vld [vmem:[#allocation8 + $0x58] sm:$0xff]  ;;  %v495_v5 = vld [vmem:[#allocation8 + $0x50] sm:$0xff]  ;;  %v494_v6 = vld [vmem:[#allocation8 + $0x48] sm:$0xff] }
  0x56   :  { %1197 = vmatpush3.msra.mxu1 %v121_v12  ;;  %536 = vmatpush1.msra.mxu0 %v509_v55  ;;  %v493_v7 = vld [vmem:[#allocation8 + $0x40] sm:$0xff]  ;;  %v492_v8 = vld [vmem:[#allocation8 + $0x38] sm:$0xff] }
  0x57   :  { %1198 = vmatprep.subr.mxu1 %v120_v13  ;;  %537 = vmatprep.subr.mxu0 %v508_v56  ;;  %v1092_v9 = vld [vmem:[%s1832_s2] ss:$0 sm:$0xff] }
  0x58   :  { %1199 = vmatpush3.msra.mxu1 %v120_v13  ;;  %538 = vmatpush1.msra.mxu0 %v507_v57 }
  0x59   :  { %1200 = vmatprep.subr.mxu1 %v119_v14  ;;  %539 = vmatprep.subr.mxu0 %v506_v58  ;;  %v491_v58 = vld [vmem:[#allocation8 + $0x30] sm:$0xff] }
  0x5a   :  { %1201 = vmatpush3.msra.mxu1 %v119_v14  ;;  %540 = vmatpush1.msra.mxu0 %v505_v59  ;;  %v490_v59 = vld [vmem:[#allocation8 + $0x28] sm:$0xff] }
  0x5b   :  { %1202 = vmatprep.subr.mxu1 %v118_v15  ;;  %541 = vmatprep.subr.mxu0 %v504_v60  ;;  %v489_v60 = vld [vmem:[#allocation8 + $0x20] sm:$0xff] }
  0x5c   :  { %1203 = vmatpush3.msra.mxu1 %v118_v15  ;;  %542 = vmatpush1.msra.mxu0 %v503_v61  ;;  %v488_v61 = vld [vmem:[#allocation8 + $0x18] sm:$0xff] }
  0x5d   :  { %1204 = vmatprep.subr.mxu1 %v117_v16  ;;  %543 = vmatprep.subr.mxu0 %v502_v62  ;;  %v487_v62 = vld [vmem:[#allocation8 + $0x10] sm:$0xff] }
  0x5e   :  { %1205 = vmatpush3.msra.mxu1 %v117_v16  ;;  %544 = vmatpush1.msra.mxu0 %v501_v63  ;;  %v486_v63 = vld [vmem:[#allocation8 + $0x8] sm:$0xff] }
  0x5f   :  { %1207 = vmatmul.mubr.f32.vlgmr.msra.gmra.mxu1 %v102_v17  ;;  %1230 = vmatprep.subr.mxu1 %v316_v18 }
  0x60   :  { %1209 = vmatprep.mubr.f32.mxu1 %v103_v19  ;;  %1231 = vmatpush3.msra.mxu1 %v316_v18 }
  0x61   :  { %1232 = vmatprep.subr.mxu1 %v315_v20  ;;  %545 = vmatprep.subr.mxu0 %v500_v0  ;;  %v485_v0 = vld [vmem:[#allocation8] sm:$0xff] }
  0x62   :  { %1233 = vmatpush3.msra.mxu1 %v315_v20  ;;  %546 = vmatpush1.msra.mxu0 %v499_v1  ;;  %v1489_v1 = vmov 0.0  }
  0x63   :  { %1210 = vmatmul.mubr.f32.gmra.mxu1 %v104_v21  ;;  %1234 = vmatprep.subr.mxu1 %v314_v22 }
  0x64   :  { %1212 = vmatprep.mubr.f32.mxu1 %v105_v23  ;;  %1235 = vmatpush3.msra.mxu1 %v314_v22 }
  0x65   :  { %1236 = vmatprep.subr.mxu1 %v313_v24  ;;  %547 = vmatprep.subr.mxu0 %v498_v2 }
  0x66   :  { %1237 = vmatpush3.msra.mxu1 %v313_v24  ;;  %548 = vmatpush1.msra.mxu0 %v497_v3  ;;  %v1576_v3 = vld [vmem:[%s1834_s4] ss:$0 sm:$0xff] }
  0x67   :  { %1213 = vmatmul.mubr.f32.gmra.mxu1 %v106_v25  ;;  %1238 = vmatprep.subr.mxu1 %v312_v26 }
  0x68   :  { %1215 = vmatprep.mubr.f32.mxu1 %v107_v27  ;;  %1239 = vmatpush3.msra.mxu1 %v312_v26 }
  0x69   :  { %1240 = vmatprep.subr.mxu1 %v311_v28  ;;  %549 = vmatprep.subr.mxu0 %v496_v4 }
  0x6a   :  { %1241 = vmatpush3.msra.mxu1 %v311_v28  ;;  %550 = vmatpush1.msra.mxu0 %v495_v5 }
  0x6b   :  { %1216 = vmatmul.mubr.f32.gmra.mxu1 %v108_v29  ;;  %1242 = vmatprep.subr.mxu1 %v310_v30 }
  0x6c   :  { %1218 = vmatprep.mubr.f32.mxu1 %v109_v31  ;;  %1243 = vmatpush3.msra.mxu1 %v310_v30 }
  0x6d   :  { %1244 = vmatprep.subr.mxu1 %v309_v32  ;;  %551 = vmatprep.subr.mxu0 %v494_v6 }
  0x6e   :  { %1245 = vmatpush3.msra.mxu1 %v309_v32  ;;  %552 = vmatpush1.msra.mxu0 %v493_v7 }
  0x6f   :  { %1219 = vmatmul.mubr.f32.gmra.mxu1 %v110_v33  ;;  %1246 = vmatprep.subr.mxu1 %v308_v34 }
  0x70   :  { %1221 = vmatprep.mubr.f32.mxu1 %v111_v35  ;;  %1247 = vmatpush3.msra.mxu1 %v308_v34 }
  0x71   :  { %1248 = vmatprep.subr.mxu1 %v307_v36  ;;  %553 = vmatprep.subr.mxu0 %v492_v8 }
  0x72   :  { %1249 = vmatpush3.msra.mxu1 %v307_v36  ;;  %554 = vmatpush1.msra.mxu0 %v491_v58 }
  0x73   :  { %1222 = vmatmul.mubr.f32.gmra.mxu1 %v112_v37  ;;  %1250 = vmatprep.subr.mxu1 %v306_v38 }
  0x74   :  { %1224 = vmatprep.mubr.f32.mxu1 %v113_v39  ;;  %1251 = vmatpush3.msra.mxu1 %v306_v38 }
  0x75   :  { %1252 = vmatprep.subr.mxu1 %v305_v40  ;;  %555 = vmatprep.subr.mxu0 %v490_v59 }
  0x76   :  { %1253 = vmatpush3.msra.mxu1 %v305_v40  ;;  %556 = vmatpush1.msra.mxu0 %v489_v60  ;;  %v1623_v60 = vld [vmem:[#allocation10 + $0x8] sm:$0xff] }
  0x77   :  { %1225 = vmatmul.mubr.f32.gmra.mxu1 %v114_v41  ;;  %1254 = vmatprep.subr.mxu1 %v304_v42 }
  0x78   :  { %1227 = vmatprep.mubr.f32.mxu1 %v115_v43  ;;  %1255 = vmatpush3.msra.mxu1 %v304_v42 }
  0x79   :  { %1256 = vmatprep.subr.mxu1 %v303_v45  ;;  %557 = vmatprep.subr.mxu0 %v488_v61 }
  0x7a   :  { %1257 = vmatpush3.msra.mxu1 %v303_v45  ;;  %558 = vmatpush1.msra.mxu0 %v487_v62 }
  0x7b   :  { %1228 = vmatmul.mubr.f32.gmra.mxu1 %v116_v44  ;;  %1258 = vmatprep.subr.mxu1 %v302_v46 }
  0x7c   :  { %1259 = vmatpush3.msra.mxu1 %v302_v46  ;;  %559 = vmatprep.subr.mxu0 %v486_v63 }
  0x7d   :  { %1260 = vmatprep.subr.mxu1 %v301_v47  ;;  %560 = vmatpush1.msra.mxu0 %v485_v0 }
  0x7e   :  { %1261 = vmatpush3.msra.mxu1 %v301_v47  ;;  %593 = vmatprep.mubr.f32.mxu0 %v1489_v1 }
 0x11f   :  { %v1208_v10 = vpop.f32.mrf.mxu1 }
 0x120   :  { %v212_v11 = vadd.f32 %v1208_v10, %v1092_v9 }
 0x121   :  { %v206_v12 = vpop.f32.mrf.mxu1 }
 0x122   :  { %v207_v13 = vadd.f32 %v1092_v9, %v206_v12  ;;  %v286_v17 = vmax.f32 %v212_v11, 0.0 }
 0x123   :  { %v1211_v14 = vpop.f32.mrf.mxu1 }
 0x124   :  { %v285_v15 = vmax.f32 %v207_v13, 0.0  ;;  %v222_v16 = vadd.f32 %v1211_v14, %v1092_v9 }
 0x125   :  { %v216_v18 = vpop.f32.mrf.mxu1 }
 0x126   :  { %v217_v19 = vadd.f32 %v1092_v9, %v216_v18  ;;  %1262 = vmatprep.mubr.f32.mxu1 %v285_v15  ;;  %v288_v20 = vmax.f32 %v222_v16, 0.0 }
 0x127   :  { %1263 = vmatmul.mubr.f32.vlgmr.msra.gmra.mxu1 %v286_v17  ;;  %v1214_v21 = vpop.f32.mrf.mxu1 }
 0x128   :  { %v287_v22 = vmax.f32 %v217_v19, 0.0  ;;  %v232_v23 = vadd.f32 %v1214_v21, %v1092_v9 }
 0x129   :  { %v226_v24 = vpop.f32.mrf.mxu1 }
 0x12a   :  { %1265 = vmatprep.mubr.f32.mxu1 %v287_v22  ;;  %v227_v25 = vadd.f32 %v1092_v9, %v226_v24  ;;  %v290_v26 = vmax.f32 %v232_v23, 0.0 }
 0x12b   :  { %1266 = vmatmul.mubr.f32.gmra.mxu1 %v288_v20  ;;  %v1217_v27 = vpop.f32.mrf.mxu1 }
 0x12c   :  { %v289_v28 = vmax.f32 %v227_v25, 0.0  ;;  %v242_v29 = vadd.f32 %v1217_v27, %v1092_v9 }
 0x12d   :  { %v236_v30 = vpop.f32.mrf.mxu1 }
 0x12e   :  { %1268 = vmatprep.mubr.f32.mxu1 %v289_v28  ;;  %v237_v31 = vadd.f32 %v1092_v9, %v236_v30  ;;  %v292_v32 = vmax.f32 %v242_v29, 0.0 }
 0x12f   :  { %1269 = vmatmul.mubr.f32.gmra.mxu1 %v290_v26  ;;  %v1220_v33 = vpop.f32.mrf.mxu1 }
 0x130   :  { %v291_v34 = vmax.f32 %v237_v31, 0.0  ;;  %v252_v35 = vadd.f32 %v1220_v33, %v1092_v9 }
 0x131   :  { %v246_v36 = vpop.f32.mrf.mxu1 }
 0x132   :  { %1271 = vmatprep.mubr.f32.mxu1 %v291_v34  ;;  %v247_v37 = vadd.f32 %v1092_v9, %v246_v36  ;;  %v294_v38 = vmax.f32 %v252_v35, 0.0 }
 0x133   :  { %1272 = vmatmul.mubr.f32.gmra.mxu1 %v292_v32  ;;  %v1223_v39 = vpop.f32.mrf.mxu1 }
 0x134   :  { %v293_v40 = vmax.f32 %v247_v37, 0.0  ;;  %v262_v41 = vadd.f32 %v1223_v39, %v1092_v9 }
 0x135   :  { %v256_v42 = vpop.f32.mrf.mxu1 }
 0x136   :  { %1274 = vmatprep.mubr.f32.mxu1 %v293_v40  ;;  %v257_v43 = vadd.f32 %v1092_v9, %v256_v42  ;;  %v296_v44 = vmax.f32 %v262_v41, 0.0 }
 0x137   :  { %1275 = vmatmul.mubr.f32.gmra.mxu1 %v294_v38  ;;  %v1226_v45 = vpop.f32.mrf.mxu1 }
 0x138   :  { %v295_v46 = vmax.f32 %v257_v43, 0.0  ;;  %v272_v47 = vadd.f32 %v1226_v45, %v1092_v9 }
 0x139   :  { %v266_v48 = vpop.f32.mrf.mxu1 }
 0x13a   :  { %1277 = vmatprep.mubr.f32.mxu1 %v295_v46  ;;  %v267_v49 = vadd.f32 %v1092_v9, %v266_v48  ;;  %v298_v50 = vmax.f32 %v272_v47, 0.0 }
 0x13b   :  { %1278 = vmatmul.mubr.f32.gmra.mxu1 %v296_v44  ;;  %v1229_v51 = vpop.f32.mrf.mxu1 }
 0x13c   :  { %v297_v52 = vmax.f32 %v267_v49, 0.0  ;;  %v282_v53 = vadd.f32 %v1229_v51, %v1092_v9  ;;  %v519_v51 = vlaneseq }
 0x13d   :  { %v276_v54 = vpop.f32.mrf.mxu1 }
 0x13e   :  { %1280 = vmatprep.mubr.f32.mxu1 %v297_v52  ;;  %v277_v55 = vadd.f32 %v1092_v9, %v276_v54  ;;  %v300_v56 = vmax.f32 %v282_v53, 0.0  ;;  %v1610_v52 = vshrl.u32 %v519_v51, 7  ;;  %v517_v54 = vld [vmem:[%s1836_s6] sm:$0x3]  ;;  %s1490_s6 = smov [#allocation11]  }
 0x13f   :  { %1281 = vmatmul.mubr.f32.gmra.mxu1 %v298_v50  ;;  %s1064_s18 = sshll.u32 %s1490_s6, 4  ;;  %s1065_s18 = int_to_ptr.vmem [resolvable:$true] %s1064_s18 }
 0x140   :  { %v299_v57 = vmax.f32 %v277_v55, 0.0  ;;  %v525_v53 = vsub.s32 1, %v1610_v52  ;;  %v1616_v55 = vld [vmem:[#allocation10] sm:$0xff]  ;;  %s1430_s19 = scalar_lea.vmem %s1065_s18, 2048  ;;  %p1435_p12 = scmp.lt.s32.totalorder %s1065_s18, %s1065_s18 }
 0x141   :  { %v818_v58 = vmul.f32 -0.5, %v1616_v55  ;;  %p1431_p11 = scmp.ne.s32.totalorder %s1065_s18, %s1430_s19  ;;  %p1436_p13 = scmp.lt.s32.totalorder %s1430_s19, %s1430_s19 }
 0x142   :  { %1283 = vmatprep.mubr.f32.mxu1 %v299_v57 }
 0x143   :  { %1284 = vmatmul.mubr.f32.gmra.mxu1 %v300_v56  ;;  %v1618_v56 = vrot.slane %v517_v54, %v525_v53  ;;  %v834_v0 = vmul.f32 %v818_v58, %v1616_v55  ;;  %v1662_v53 = vld [vmem:[#allocation10 + $0x30] sm:$0xff]  ;;  %p1437_p0 = por %p1436_p13, %p1435_p12 }
 0x145   :  { %p1438_p1 = pnand %p1437_p0, %p1431_p11 }
 0x1e7   :  { %v1264_v2 = vpop.f32.mrf.mxu1 }
 0x1e8   :  { %v396_v7 = vadd.f32 %v1264_v2, %v1576_v3  ;;  %v1630_v2 = vld [vmem:[#allocation10 + $0x10] sm:$0xff] }
 0x1e9   :  { %v390_v4 = vpop.f32.mrf.mxu1 }
 0x1ea   :  { %v391_v5 = vadd.f32 %v1576_v3, %v390_v4  ;;  %v470_v10 = vmax.f32 %v396_v7, 0.0  ;;  %v820_v7 = vmul.f32 -0.5, %v1630_v2 }
 0x1eb   :  { %v1267_v6 = vpop.f32.mrf.mxu1 }
 0x1ec   :  { %v469_v8 = vmax.f32 %v391_v5, 0.0  ;;  %v406_v13 = vadd.f32 %v1267_v6, %v1576_v3 }
 0x1ed   :  { %v400_v9 = vpop.f32.mrf.mxu1 }
 0x1ee   :  { %594 = vmatmul.mubr.f32.vlgmr.msra.gmra.mxu0 %v469_v8  ;;  %v401_v11 = vadd.f32 %v1576_v3, %v400_v9  ;;  %v472_v16 = vmax.f32 %v406_v13, 0.0  ;;  %v1637_v13 = vld [vmem:[#allocation10 + $0x18] sm:$0xff] }
 0x1ef   :  { %599 = vmatprep.mubr.f32.mxu0 %v1489_v1  ;;  %v1270_v12 = vpop.f32.mrf.mxu1 }
 0x1f0   :  { %v471_v14 = vmax.f32 %v401_v11, 0.0  ;;  %v416_v19 = vadd.f32 %v1270_v12, %v1576_v3 }
 0x1f1   :  { %v410_v15 = vpop.f32.mrf.mxu1 }
 0x1f2   :  { %600 = vmatmul.mubr.f32.gmra.mxu0 %v470_v10  ;;  %v411_v17 = vadd.f32 %v1576_v3, %v410_v15  ;;  %v474_v22 = vmax.f32 %v416_v19, 0.0 }
 0x1f3   :  { %605 = vmatprep.mubr.f32.mxu0 %v1489_v1  ;;  %v1273_v18 = vpop.f32.mrf.mxu1 }
 0x1f4   :  { %v473_v20 = vmax.f32 %v411_v17, 0.0  ;;  %v426_v25 = vadd.f32 %v1273_v18, %v1576_v3  ;;  %v836_v18 = vmul.f32 %v820_v7, %v1630_v2 }
 0x1f5   :  { %v420_v21 = vpop.f32.mrf.mxu1 }
 0x1f6   :  { %606 = vmatmul.mubr.f32.gmra.mxu0 %v471_v14  ;;  %v421_v23 = vadd.f32 %v1576_v3, %v420_v21  ;;  %v476_v28 = vmax.f32 %v426_v25, 0.0 }
 0x1f7   :  { %611 = vmatprep.mubr.f32.mxu0 %v1489_v1  ;;  %v1276_v24 = vpop.f32.mrf.mxu1 }
 0x1f8   :  { %v475_v26 = vmax.f32 %v421_v23, 0.0  ;;  %v436_v31 = vadd.f32 %v1276_v24, %v1576_v3 }
 0x1f9   :  { %v430_v27 = vpop.f32.mrf.mxu1 }
 0x1fa   :  { %612 = vmatmul.mubr.f32.gmra.mxu0 %v472_v16  ;;  %v431_v29 = vadd.f32 %v1576_v3, %v430_v27  ;;  %v478_v34 = vmax.f32 %v436_v31, 0.0  ;;  %v1645_v27 = vld [vmem:[#allocation10 + $0x20] sm:$0xff] }
 0x1fb   :  { %617 = vmatprep.mubr.f32.mxu0 %v1489_v1  ;;  %v1279_v30 = vpop.f32.mrf.mxu1 }
 0x1fc   :  { %v477_v32 = vmax.f32 %v431_v29, 0.0  ;;  %v446_v37 = vadd.f32 %v1279_v30, %v1576_v3 }
 0x1fd   :  { %v440_v33 = vpop.f32.mrf.mxu1 }
 0x1fe   :  { %618 = vmatmul.mubr.f32.gmra.mxu0 %v473_v20  ;;  %v441_v35 = vadd.f32 %v1576_v3, %v440_v33  ;;  %v480_v40 = vmax.f32 %v446_v37, 0.0 }
 0x1ff   :  { %623 = vmatprep.mubr.f32.mxu0 %v1489_v1  ;;  %v1282_v36 = vpop.f32.mrf.mxu1 }
 0x200   :  { %v479_v38 = vmax.f32 %v441_v35, 0.0  ;;  %v456_v43 = vadd.f32 %v1282_v36, %v1576_v3  ;;  %v822_v35 = vmul.f32 -0.5, %v1645_v27 }
 0x201   :  { %v450_v39 = vpop.f32.mrf.mxu1 }
 0x202   :  { %624 = vmatmul.mubr.f32.gmra.mxu0 %v474_v22  ;;  %v451_v41 = vadd.f32 %v1576_v3, %v450_v39  ;;  %v482_v46 = vmax.f32 %v456_v43, 0.0  ;;  %v821_v22 = vmul.f32 -0.5, %v1637_v13  ;;  %v1653_v39 = vld [vmem:[#allocation10 + $0x28] sm:$0xff] }
 0x203   :  { %629 = vmatprep.mubr.f32.mxu0 %v1489_v1  ;;  %v1285_v42 = vpop.f32.mrf.mxu1 }
 0x204   :  { %v481_v44 = vmax.f32 %v451_v41, 0.0  ;;  %v466_v48 = vadd.f32 %v1285_v42, %v1576_v3  ;;  %v837_v33 = vmul.f32 %v821_v22, %v1637_v13 }
 0x205   :  { %v460_v45 = vpop.f32.mrf.mxu1 }
 0x206   :  { %630 = vmatmul.mubr.f32.gmra.mxu0 %v475_v26  ;;  %v461_v47 = vadd.f32 %v1576_v3, %v460_v45  ;;  %v484_v50 = vmax.f32 %v466_v48, 0.0 }
 0x207   :  { %635 = vmatprep.mubr.f32.mxu0 %v1489_v1 }
 0x208   :  { %v483_v49 = vmax.f32 %v461_v47, 0.0  ;;  %v823_v47 = vmul.f32 -0.5, %v1653_v39 }
 0x20a   :  { %636 = vmatmul.mubr.f32.gmra.mxu0 %v476_v28  ;;  %v521_v28 = vsub.s32 0, %v1610_v52 }
 0x20b   :  { %641 = vmatprep.mubr.f32.mxu0 %v1489_v1 }
 0x20c   :  { %v1657_v41 = vrot.slane %v517_v54, %v521_v28 }
 0x20e   :  { %642 = vmatmul.mubr.f32.gmra.mxu0 %v477_v32 }
 0x20f   :  { %647 = vmatprep.mubr.f32.mxu0 %v1489_v1 }
 0x212   :  { %648 = vmatmul.mubr.f32.gmra.mxu0 %v478_v34 }
 0x213   :  { %653 = vmatprep.mubr.f32.mxu0 %v1489_v1 }
 0x216   :  { %654 = vmatmul.mubr.f32.gmra.mxu0 %v479_v38 }
 0x217   :  { %659 = vmatprep.mubr.f32.mxu0 %v1489_v1 }
 0x21a   :  { %660 = vmatmul.mubr.f32.gmra.mxu0 %v480_v40 }
 0x21b   :  { %665 = vmatprep.mubr.f32.mxu0 %v1489_v1 }
 0x21e   :  { %666 = vmatmul.mubr.f32.gmra.mxu0 %v481_v44 }
 0x21f   :  { %671 = vmatprep.mubr.f32.mxu0 %v1489_v1 }
 0x222   :  { %672 = vmatmul.mubr.f32.gmra.mxu0 %v482_v46  ;;  %v838_v46 = vmul.f32 %v822_v35, %v1645_v27 }
 0x223   :  { %677 = vmatprep.mubr.f32.mxu0 %v1489_v1 }
 0x226   :  { %678 = vmatmul.mubr.f32.gmra.mxu0 %v483_v49 }
 0x227   :  { %683 = vmatprep.mubr.f32.mxu0 %v1489_v1  ;;  %v819_v1 = vmul.f32 -0.5, %v1623_v60 }
 0x229   :  { %v835_v11 = vmul.f32 %v819_v1, %v1623_v60 }
 0x22a   :  { %684 = vmatmul.mubr.f32.gmra.mxu0 %v484_v50 }
 0x2ae   :  { %v1620_v57 = vpop.f32.mrf.mxu0 }
 0x2af   :  { %v596_v54 = vadd.f32 %v1620_v57, %v1657_v41 }
 0x2b0   :  { %v597_v59 = vpop.f32.mrf.mxu0 }
 0x2b1   :  { %v598_v61 = vadd.f32 %v597_v59, %v1618_v56 }
 0x2b2   :  { %v1626_v62 = vpop.f32.mrf.mxu0 }
 0x2b3   :  { %v690_v63 = vmax.f32 %v598_v61, -20.0 }
 0x2b4   :  { %v603_v3 = vpop.f32.mrf.mxu0 }
 0x2b5   :  { %v706_v4 = vmin.f32 %v690_v63, 2.0  ;;  %v604_v5 = vadd.f32 %v603_v3, %v1618_v56 }
 0x2b6   :  { %v1633_v6 = vpop.f32.mrf.mxu0 }
 0x2b7   :  { %v722_v8 = vmul.f32 1.442695, %v706_v4  ;;  %v691_v9 = vmax.f32 %v604_v5, -20.0  ;;  %v850_v10 = vsub.f32 %v834_v0, %v706_v4  ;;  %v839_v4 = vmul.f32 %v823_v47, %v1653_v39 }
 0x2b8   :  { %v609_v12 = vpop.f32.mrf.mxu0  ;;  %v824_v5 = vmul.f32 -0.5, %v1662_v53  ;;  %v608_v28 = vadd.f32 %v1633_v6, %v1657_v41 }
 0x2b9   :  { %1298 = vpow2.f32 %v722_v8  ;;  %v707_v14 = vmin.f32 %v691_v9, 2.0  ;;  %v610_v15 = vadd.f32 %v609_v12, %v1618_v56  ;;  %v1094_v16 = vadd.f32 -0.9189385, %v850_v10  ;;  %v1672_v10 = vld [vmem:[#allocation10 + $0x38] sm:$0xff] }
 0x2ba   :  { %v1640_v17 = vpop.f32.mrf.mxu0  ;;  %v602_v12 = vadd.f32 %v1626_v62, %v1657_v41 }
 0x2bb   :  { %v724_v19 = vmul.f32 1.442695, %v707_v14  ;;  %v692_v20 = vmax.f32 %v610_v15, -20.0  ;;  %882 = vadd.xlane.f32.xlu0 %v1094_v16  ;;  %v851_v21 = vsub.f32 %v835_v11, %v707_v14 }
 0x2bc   :  { %v615_v23 = vpop.f32.mrf.mxu0 }
 0x2bd   :  { %1300 = vpow2.f32 %v724_v19  ;;  %v708_v24 = vmin.f32 %v692_v20, 2.0  ;;  %v616_v25 = vadd.f32 %v615_v23, %v1618_v56  ;;  %v1095_v26 = vadd.f32 -0.9189385, %v851_v21 }
 0x2be   :  { %v1648_v29 = vpop.f32.mrf.mxu0  ;;  %v840_v20 = vmul.f32 %v824_v5, %v1662_v53  ;;  %v825_v21 = vmul.f32 -0.5, %v1672_v10 }
 0x2bf   :  { %v726_v30 = vmul.f32 1.442695, %v708_v24  ;;  %v693_v31 = vmax.f32 %v616_v25, -20.0  ;;  %884 = vadd.xlane.f32.xlu0 %v1095_v26  ;;  %v852_v32 = vsub.f32 %v836_v18, %v708_v24  ;;  %v1682_v25 = vld [vmem:[#allocation10 + $0x40] sm:$0xff] }
 0x2c0   :  { %v621_v34 = vpop.f32.mrf.mxu0  ;;  %v841_v35 = vmul.f32 %v825_v21, %v1672_v10 }
 0x2c1   :  { %1302 = vpow2.f32 %v726_v30  ;;  %v709_v36 = vmin.f32 %v693_v31, 2.0  ;;  %v622_v37 = vadd.f32 %v621_v34, %v1618_v56  ;;  %v1096_v38 = vadd.f32 -0.9189385, %v852_v32 }
 0x2c2   :  { %v1655_v40 = vpop.f32.mrf.mxu0 }
 0x2c3   :  { %v728_v42 = vmul.f32 1.442695, %v709_v36  ;;  %v694_v43 = vmax.f32 %v622_v37, -20.0  ;;  %886 = vadd.xlane.f32.xlu1 %v1096_v38  ;;  %v853_v44 = vsub.f32 %v837_v33, %v709_v36  ;;  %v826_v36 = vmul.f32 -0.5, %v1682_v25 }
 0x2c4   :  { %v627_v45 = vpop.f32.mrf.mxu0 }
 0x2c5   :  { %1304 = vpow2.f32 %v728_v42  ;;  %v710_v48 = vmin.f32 %v694_v43, 2.0  ;;  %v628_v49 = vadd.f32 %v627_v45, %v1618_v56  ;;  %v1097_v50 = vadd.f32 -0.9189385, %v853_v44  ;;  %v1692_v43 = vld [vmem:[#allocation10 + $0x48] sm:$0xff] }
 0x2c6   :  { %v1299_v58 = vpop.eup %1298  ;;  %v1664_v59 = vpop.f32.mrf.mxu0  ;;  %v614_v45 = vadd.f32 %v1640_v17, %v1657_v41 }
 0x2c7   :  { %v770_v61 = vmul.f32 %v1299_v58, %v1616_v55  ;;  %v730_v63 = vmul.f32 1.442695, %v710_v48  ;;  %v695_v0 = vmax.f32 %v628_v49, -20.0  ;;  %888 = vadd.xlane.f32.xlu1 %v1097_v50  ;;  %v854_v3 = vsub.f32 %v838_v46, %v710_v48 }
 0x2c8   :  { %v633_v1 = vpop.f32.mrf.mxu0  ;;  %v842_v58 = vmul.f32 %v826_v36, %v1682_v25 }
 0x2c9   :  { %v786_v7 = vadd.f32 %v770_v61, %v596_v54  ;;  %1306 = vpow2.f32 %v730_v63  ;;  %v711_v8 = vmin.f32 %v695_v0, 2.0  ;;  %v634_v9 = vadd.f32 %v633_v1, %v1618_v56  ;;  %v1702_v1 = vld [vmem:[#allocation10 + $0x50] sm:$0xff] }
 0x2ca   :  { %v1301_v11 = vpop.eup %1300  ;;  %v1674_v57 = vpop.f32.mrf.mxu0  ;;  %v1098_v55 = vadd.f32 -0.9189385, %v854_v3  ;;  %v827_v54 = vmul.f32 -0.5, %v1692_v43 }
 0x2cb   :  { %802 = vst [vmem:[#allocation11] sm:$0xff] %v786_v7  ;;  %v771_v14 = vmul.f32 %v1301_v11, %v1623_v60  ;;  %v732_v15 = vmul.f32 1.442695, %v711_v8  ;;  %v696_v16 = vmax.f32 %v634_v9, -20.0  ;;  %v855_v19 = vsub.f32 %v839_v4, %v711_v8 }
 0x2cc   :  { %890 = vadd.xlane.f32.xlu0 %v1098_v55  ;;  %v639_v18 = vpop.f32.mrf.mxu0  ;;  %v620_v4 = vadd.f32 %v1648_v29, %v1657_v41  ;;  %v843_v55 = vmul.f32 %v827_v54, %v1692_v43 }
 0x2cd   :  { %v787_v22 = vadd.f32 %v771_v14, %v602_v12  ;;  %1308 = vpow2.f32 %v732_v15  ;;  %v712_v23 = vmin.f32 %v696_v16, 2.0  ;;  %v640_v24 = vadd.f32 %v639_v18, %v1618_v56  ;;  %v1712_v18 = vld [vmem:[#allocation10 + $0x58] sm:$0xff] }
 0x2ce   :  { %v1303_v62 = vpop.eup %1302  ;;  %v1684_v26 = vpop.f32.mrf.mxu0  ;;  %v1099_v60 = vadd.f32 -0.9189385, %v855_v19  ;;  %v828_v12 = vmul.f32 -0.5, %v1702_v1 }
 0x2cf   :  { %803 = vst [vmem:[#allocation11 + $0x8] sm:$0xff] %v787_v22  ;;  %v772_v30 = vmul.f32 %v1303_v62, %v1630_v2  ;;  %v734_v31 = vmul.f32 1.442695, %v712_v23  ;;  %v697_v32 = vmax.f32 %v640_v24, -20.0  ;;  %v856_v34 = vsub.f32 %v840_v20, %v712_v23 }
 0x2d0   :  { %892 = vadd.xlane.f32.xlu1 %v1099_v60  ;;  %v645_v33 = vpop.f32.mrf.mxu0  ;;  %v626_v20 = vadd.f32 %v1655_v40, %v1657_v41  ;;  %v844_v60 = vmul.f32 %v828_v12, %v1702_v1  ;;  %v644_v12 = vadd.f32 %v1684_v26, %v1657_v41 }
 0x2d1   :  { %v788_v37 = vadd.f32 %v772_v30, %v608_v28  ;;  %1310 = vpow2.f32 %v734_v31  ;;  %v713_v38 = vmin.f32 %v697_v32, 2.0  ;;  %v646_v42 = vadd.f32 %v645_v33, %v1618_v56  ;;  %v1722_v33 = vld [vmem:[#allocation10 + $0x60] sm:$0xff] }
 0x2d2   :  { %v1305_v6 = vpop.eup %1304  ;;  %v1694_v44 = vpop.f32.mrf.mxu0  ;;  %v1100_v2 = vadd.f32 -0.9189385, %v856_v34  ;;  %v829_v28 = vmul.f32 -0.5, %v1712_v18 }
 0x2d3   :  { %804 = vst [vmem:[#allocation11 + $0x10] sm:$0xff] %v788_v37  ;;  %v773_v46 = vmul.f32 %v1305_v6, %v1637_v13  ;;  %v736_v47 = vmul.f32 1.442695, %v713_v38  ;;  %v698_v48 = vmax.f32 %v646_v42, -20.0  ;;  %v857_v50 = vsub.f32 %v841_v35, %v713_v38 }
 0x2d4   :  { %894 = vadd.xlane.f32.xlu0 %v1100_v2  ;;  %v651_v49 = vpop.f32.mrf.mxu0  ;;  %v632_v35 = vadd.f32 %v1664_v59, %v1657_v41  ;;  %v845_v2 = vmul.f32 %v829_v28, %v1712_v18 }
 0x2d5   :  { %v789_v61 = vadd.f32 %v773_v46, %v614_v45  ;;  %1312 = vpow2.f32 %v736_v47  ;;  %v714_v63 = vmin.f32 %v698_v48, 2.0  ;;  %v652_v0 = vadd.f32 %v651_v49, %v1618_v56  ;;  %v1732_v49 = vld [vmem:[#allocation10 + $0x68] sm:$0xff] }
 0x2d6   :  { %v1307_v17 = vpop.eup %1306  ;;  %v1704_v3 = vpop.f32.mrf.mxu0  ;;  %v1101_v13 = vadd.f32 -0.9189385, %v857_v50  ;;  %v830_v45 = vmul.f32 -0.5, %v1722_v33 }
 0x2d7   :  { %805 = vst [vmem:[#allocation11 + $0x18] sm:$0xff] %v789_v61  ;;  %v774_v5 = vmul.f32 %v1307_v17, %v1645_v27  ;;  %v738_v7 = vmul.f32 1.442695, %v714_v63  ;;  %v699_v8 = vmax.f32 %v652_v0, -20.0  ;;  %v858_v11 = vsub.f32 %v842_v58, %v714_v63  ;;  %v1739_v0 = vld [vmem:[#allocation10 + $0x70] sm:$0xff] }
 0x2d8   :  { %896 = vadd.xlane.f32.xlu1 %v1101_v13  ;;  %v657_v9 = vpop.f32.mrf.mxu0  ;;  %v638_v58 = vadd.f32 %v1674_v57, %v1657_v41 }
 0x2d9   :  { %v790_v14 = vadd.f32 %v774_v5, %v620_v4  ;;  %1314 = vpow2.f32 %v738_v7  ;;  %v715_v15 = vmin.f32 %v699_v8, 2.0  ;;  %v658_v16 = vadd.f32 %v657_v9, %v1618_v56 }
 0x2da   :  { %v1309_v29 = vpop.eup %1308  ;;  %v1714_v19 = vpop.f32.mrf.mxu0  ;;  %v1102_v27 = vadd.f32 -0.9189385, %v858_v11  ;;  %v846_v4 = vmul.f32 %v830_v45, %v1722_v33  ;;  %v831_v5 = vmul.f32 -0.5, %v1732_v49 }
 0x2db   :  { %806 = vst [vmem:[#allocation11 + $0x20] sm:$0xff] %v790_v14  ;;  %v775_v21 = vmul.f32 %v1309_v29, %v1653_v39  ;;  %v740_v22 = vmul.f32 1.442695, %v715_v15  ;;  %v700_v23 = vmax.f32 %v658_v16, -20.0  ;;  %v859_v62 = vsub.f32 %v843_v55, %v715_v15  ;;  %v1750_v29 = vld [vmem:[#allocation10 + $0x78] sm:$0xff] }
 0x2dc   :  { %898 = vadd.xlane.f32.xlu0 %v1102_v27  ;;  %v663_v24 = vpop.f32.mrf.mxu0  ;;  %v832_v55 = vmul.f32 -0.5, %v1739_v0 }
 0x2dd   :  { %v791_v30 = vadd.f32 %v775_v21, %v626_v20  ;;  %1316 = vpow2.f32 %v740_v22  ;;  %v716_v31 = vmin.f32 %v700_v23, 2.0  ;;  %v664_v32 = vadd.f32 %v663_v24, %v1618_v56 }
 0x2de   :  { %v1311_v40 = vpop.eup %1310  ;;  %v1724_v34 = vpop.f32.mrf.mxu0  ;;  %v1103_v39 = vadd.f32 -0.9189385, %v859_v62  ;;  %v847_v21 = vmul.f32 %v831_v5, %v1732_v49  ;;  %v848_v28 = vmul.f32 %v832_v55, %v1739_v0 }
 0x2df   :  { %807 = vst [vmem:[#allocation11 + $0x28] sm:$0xff] %v791_v30  ;;  %v776_v36 = vmul.f32 %v1311_v40, %v1662_v53  ;;  %v742_v37 = vmul.f32 1.442695, %v716_v31  ;;  %v701_v38 = vmax.f32 %v664_v32, -20.0  ;;  %v860_v6 = vsub.f32 %v844_v60, %v716_v31 }
 0x2e0   :  { %900 = vadd.xlane.f32.xlu1 %v1103_v39  ;;  %v669_v42 = vpop.f32.mrf.mxu0  ;;  %v650_v30 = vadd.f32 %v1694_v44, %v1657_v41 }
 0x2e1   :  { %v792_v46 = vadd.f32 %v776_v36, %v632_v35  ;;  %1318 = vpow2.f32 %v742_v37  ;;  %v717_v47 = vmin.f32 %v701_v38, 2.0  ;;  %v670_v48 = vadd.f32 %v669_v42, %v1618_v56 }
 0x2e2   :  { %v1313_v59 = vpop.eup %1312  ;;  %v1734_v50 = vpop.f32.mrf.mxu0  ;;  %v1104_v53 = vadd.f32 -0.9189385, %v860_v6  ;;  %v656_v6 = vadd.f32 %v1704_v3, %v1657_v41 }
 0x2e3   :  { %808 = vst [vmem:[#allocation11 + $0x30] sm:$0xff] %v792_v46  ;;  %v777_v54 = vmul.f32 %v1313_v59, %v1672_v10  ;;  %v744_v61 = vmul.f32 1.442695, %v717_v47  ;;  %v702_v63 = vmax.f32 %v670_v48, -20.0  ;;  %v861_v13 = vsub.f32 %v845_v2, %v717_v47 }
 0x2e4   :  { %902 = vadd.xlane.f32.xlu0 %v1104_v53  ;;  %v675_v17 = vpop.f32.mrf.mxu0 }
 0x2e5   :  { %v793_v7 = vadd.f32 %v777_v54, %v638_v58  ;;  %1320 = vpow2.f32 %v744_v61  ;;  %v718_v8 = vmin.f32 %v702_v63, 2.0  ;;  %v676_v9 = vadd.f32 %v675_v17, %v1618_v56 }
 0x2e6   :  { %v1315_v57 = vpop.eup %1314  ;;  %v1744_v11 = vpop.f32.mrf.mxu0  ;;  %v1105_v10 = vadd.f32 -0.9189385, %v861_v13  ;;  %v668_v13 = vadd.f32 %v1724_v34, %v1657_v41 }
 0x2e7   :  { %809 = vst [vmem:[#allocation11 + $0x38] sm:$0xff] %v793_v7  ;;  %v778_v14 = vmul.f32 %v1315_v57, %v1682_v25  ;;  %v746_v15 = vmul.f32 1.442695, %v718_v8  ;;  %v703_v16 = vmax.f32 %v676_v9, -20.0  ;;  %v862_v20 = vsub.f32 %v846_v4, %v718_v8 }
 0x2e8   :  { %904 = vadd.xlane.f32.xlu1 %v1105_v10  ;;  %v681_v27 = vpop.f32.mrf.mxu0  ;;  %v833_v25 = vmul.f32 -0.5, %v1750_v29  ;;  %v680_v57 = vadd.f32 %v1744_v11, %v1657_v41 }
 0x2e9   :  { %v794_v22 = vadd.f32 %v778_v14, %v644_v12  ;;  %1322 = vpow2.f32 %v746_v15  ;;  %v719_v23 = vmin.f32 %v703_v16, 2.0  ;;  %v682_v24 = vadd.f32 %v681_v27, %v1618_v56 }
 0x2ea   :  { %v1317_v62 = vpop.eup %1316  ;;  %v685_v60 = vpop.f32.mrf.mxu0  ;;  %v1106_v26 = vadd.f32 -0.9189385, %v862_v20  ;;  %v849_v44 = vmul.f32 %v833_v25, %v1750_v29 }
 0x2eb   :  { %810 = vst [vmem:[#allocation11 + $0x40] sm:$0xff] %v794_v22  ;;  %v779_v31 = vmul.f32 %v1317_v62, %v1692_v43  ;;  %v748_v32 = vmul.f32 1.442695, %v719_v23  ;;  %v704_v40 = vmax.f32 %v682_v24, -20.0  ;;  %v863_v35 = vsub.f32 %v847_v21, %v719_v23 }
 0x2ec   :  { %906 = vadd.xlane.f32.xlu0 %v1106_v26  ;;  %v687_v39 = vpop.f32.mrf.mxu0 }
 0x2ed   :  { %v795_v36 = vadd.f32 %v779_v31, %v650_v30  ;;  %1324 = vpow2.f32 %v748_v32  ;;  %v720_v37 = vmin.f32 %v704_v40, 2.0  ;;  %v688_v38 = vadd.f32 %v687_v39, %v1618_v56 }
 0x2ee   :  { %v1319_v42 = vpop.eup %1318  ;;  %v1107_v2 = vadd.f32 -0.9189385, %v863_v35  ;;  %v662_v56 = vadd.f32 %v1714_v19, %v1657_v41  ;;  %v674_v19 = vadd.f32 %v1734_v50, %v1657_v41 }
 0x2ef   :  { %811 = vst [vmem:[#allocation11 + $0x48] sm:$0xff] %v795_v36  ;;  %v780_v43 = vmul.f32 %v1319_v42, %v1702_v1  ;;  %v750_v45 = vmul.f32 1.442695, %v720_v37  ;;  %v705_v46 = vmax.f32 %v688_v38, -20.0  ;;  %v864_v47 = vsub.f32 %v848_v28, %v720_v37 }
 0x2f0   :  { %908 = vadd.xlane.f32.xlu1 %v1107_v2 }
 0x2f1   :  { %v796_v48 = vadd.f32 %v780_v43, %v656_v6  ;;  %1326 = vpow2.f32 %v750_v45  ;;  %v721_v59 = vmin.f32 %v705_v46, 2.0  ;;  %v1108_v53 = vadd.f32 -0.9189385, %v864_v47 }
 0x2f2   :  { %v1321_v58 = vpop.eup %1320 }
 0x2f3   :  { %812 = vst [vmem:[#allocation11 + $0x50] sm:$0xff] %v796_v48  ;;  %v781_v3 = vmul.f32 %v1321_v58, %v1712_v18  ;;  %v752_v54 = vmul.f32 1.442695, %v721_v59  ;;  %910 = vadd.xlane.f32.xlu0 %v1108_v53  ;;  %v865_v61 = vsub.f32 %v849_v44, %v721_v59 }
 0x2f5   :  { %v797_v63 = vadd.f32 %v781_v3, %v662_v56  ;;  %1328 = vpow2.f32 %v752_v54  ;;  %v1109_v1 = vadd.f32 -0.9189385, %v865_v61 }
 0x2f6   :  { %v1323_v17 = vpop.eup %1322 }
 0x2f7   :  { %813 = vst [vmem:[#allocation11 + $0x58] sm:$0xff] %v797_v63  ;;  %v782_v4 = vmul.f32 %v1323_v17, %v1722_v33  ;;  %912 = vadd.xlane.f32.xlu1 %v1109_v1  ;;  %v686_v33 = vadd.f32 %v685_v60, %v1657_v41 }
 0x2f9   :  { %v798_v5 = vadd.f32 %v782_v4, %v668_v13 }
 0x2fa   :  { %v1325_v7 = vpop.eup %1324 }
 0x2fb   :  { %814 = vst [vmem:[#allocation11 + $0x60] sm:$0xff] %v798_v5  ;;  %v783_v18 = vmul.f32 %v1325_v7, %v1732_v49 }
 0x2fd   :  { %v799_v8 = vadd.f32 %v783_v18, %v674_v19 }
 0x2fe   :  { %v1327_v9 = vpop.eup %1326 }
 0x2ff   :  { %815 = vst [vmem:[#allocation11 + $0x68] sm:$0xff] %v799_v8  ;;  %v784_v34 = vmul.f32 %v1327_v9, %v1739_v0 }
 0x301   :  { %v800_v10 = vadd.f32 %v784_v34, %v680_v57 }
 0x302   :  { %v1329_v55 = vpop.eup %1328 }
 0x303   :  { %816 = vst [vmem:[#allocation11 + $0x70] sm:$0xff] %v800_v10  ;;  %v785_v12 = vmul.f32 %v1329_v55, %v1750_v29 }
 0x305   :  { %v801_v50 = vadd.f32 %v785_v12, %v686_v33 }
 0x307   :  { %817 = vst [vmem:[#allocation11 + $0x78] sm:$0xff] %v801_v50 }
 0x308   :  { %1441 = shalt.err (!%p1438_p1)
}
 0x309   :  { %1070 = dma.vmem_to_hbm [thread:$0]  %s1065_s18, 2048, %s1838_s8, [#allocation4], %s1482_s14, %s1482_s14, %s1483_s15   ;;  %v1785_v14 = vand.u32 127, %v519_v51  ;;  %vm957_vm0 = vcmask 130112   ;;  %vm964_vm1 = vcmask 195712   ;;  %vm971_vm2 = vcmask 261312  }
 0x30a   :  { %vm978_vm3 = vcmask 326912   ;;  %vm985_vm4 = vcmask 392512   ;;  %vm992_vm5 = vcmask 458112   ;;  %vm999_vm6 = vcmask 523712   ;;  %s1491_s8 = smov [#allocation12]  }
 0x30b   :  { %v952_v16 = vadd.s32 4294967288, %v1785_v14  ;;  %v959_v29 = vadd.s32 4294967280, %v1785_v14  ;;  %v966_v20 = vadd.s32 4294967272, %v1785_v14  ;;  %v973_v21 = vadd.s32 4294967264, %v1785_v14  ;;  %s1077_s14 = sshll.u32 %s1491_s8, 4  ;;  %s1078_s14 = int_to_ptr.vmem [resolvable:$true] %s1077_s14 }
 0x30c   :  { %v950_v23 = vsub.s32 %v1785_v14, %v1610_v52  ;;  %v980_v24 = vadd.s32 4294967256, %v1785_v14  ;;  %v987_v60 = vadd.s32 4294967248, %v1785_v14  ;;  %v994_v25 = vadd.s32 4294967240, %v1785_v14  ;;  %s1450_s15 = scalar_lea.vmem %s1078_s14, 16  ;;  %s1454_s22 = scalar_lea.vmem %s1078_s14, 32 }
 0x30d   :  { %v955_v62 = vsub.s32 %v952_v16, %v1610_v52  ;;  %v962_v51 = vsub.s32 %v959_v29, %v1610_v52  ;;  %v969_v28 = vsub.s32 %v966_v20, %v1610_v52  ;;  %v976_v31 = vsub.s32 %v973_v21, %v1610_v52  ;;  %p1451_p2 = scmp.ne.s32.totalorder %s1078_s14, %s1450_s15  ;;  %p1455_p3 = scmp.lt.s32.totalorder %s1078_s14, %s1078_s14 }
 0x30e   :  { %v1001_v32 = vadd.s32 4294967232, %v1785_v14  ;;  %v983_v35 = vsub.s32 %v980_v24, %v1610_v52  ;;  %v1008_v36 = vadd.s32 4294967224, %v1785_v14  ;;  %v990_v42 = vsub.s32 %v987_v60, %v1610_v52  ;;  %p1456_p4 = scmp.lt.s32.totalorder %s1454_s22, %s1450_s15 }
 0x30f   :  { %v997_v44 = vsub.s32 %v994_v25, %v1610_v52  ;;  %v1015_v43 = vadd.s32 4294967216, %v1785_v14  ;;  %v1022_v59 = vadd.s32 4294967208, %v1785_v14  ;;  %vm1006_vm7 = vcmask 589312  }
 0x310   :  { %v1004_v47 = vsub.s32 %v1001_v32, %v1610_v52  ;;  %v1011_v56 = vsub.s32 %v1008_v36, %v1610_v52  ;;  %v1029_v1 = vadd.s32 4294967200, %v1785_v14  ;;  %v1036_v5 = vadd.s32 4294967192, %v1785_v14  ;;  %p1457_p5 = por %p1456_p4, %p1455_p3 }
 0x311   :  { %v1018_v4 = vsub.s32 %v1015_v43, %v1610_v52  ;;  %v1025_v8 = vsub.s32 %v1022_v59, %v1610_v52  ;;  %v1043_v55 = vadd.s32 4294967184, %v1785_v14  ;;  %v1050_v21 = vadd.s32 4294967176, %v1785_v14 }
 0x312   :  { %v1039_v16 = vsub.s32 %v1036_v5, %v1610_v52  ;;  %vm1013_vm8 = vcmask 654912   ;;  %vm1020_vm9 = vcmask 720512   ;;  %vm1027_vm10 = vcmask 786112   ;;  %p1458_p6 = pnand %p1457_p5, %p1451_p2 }
 0x313   :  { %v1046_v24 = vsub.s32 %v1043_v55, %v1610_v52  ;;  %vm1034_vm11 = vcmask 851712   ;;  %v1053_v14 = vsub.s32 %v1050_v21, %v1610_v52  ;;  %vm1041_vm12 = vcmask 917312  }
 0x314   :  { %vm1048_vm13 = vcmask 982912   ;;  %vm1055_vm14 = vcmask 1048512  }
 0x344   :  { %v883_v41 = vpop.xlane.xlu0 %882 }
 0x345   :  { %v914_v37 = vadd.f32 113.94838, %v883_v41  ;;  %v1032_v41 = vsub.s32 %v1029_v1, %v1610_v52 }
 0x347   :  { %v951_v3 = vrot.slane %v914_v37, %v950_v23 }
 0x348   :  { %v885_v0 = vpop.xlane.xlu0 %884 }
 0x349   :  { %v915_v30 = vadd.f32 113.94838, %v885_v0 }
 0x34b   :  { %v956_v45 = vrot.slane %v915_v30, %v955_v62 }
 0x34c   :  { %v887_v49 = vpop.xlane.xlu1 %886 }
 0x34d   :  { %v916_v39 = vadd.f32 113.94838, %v887_v49  ;;  %v958_v7 = vsel %vm957_vm0, %v956_v45, %v951_v3 }
 0x34f   :  { %v963_v53 = vrot.slane %v916_v39, %v962_v51 }
 0x350   :  { %v889_v11 = vpop.xlane.xlu1 %888 }
 0x351   :  { %v917_v38 = vadd.f32 113.94838, %v889_v11  ;;  %v965_v57 = vsel %vm964_vm1, %v963_v53, %v958_v7 }
 0x353   :  { %v970_v54 = vrot.slane %v917_v38, %v969_v28 }
 0x355   :  { %v891_v15 = vpop.xlane.xlu0 %890  ;;  %v972_v33 = vsel %vm971_vm2, %v970_v54, %v965_v57 }
 0x356   :  { %v918_v2 = vadd.f32 113.94838, %v891_v15 }
 0x358   :  { %v977_v17 = vrot.slane %v918_v2, %v976_v31 }
 0x359   :  { %v893_v27 = vpop.xlane.xlu1 %892 }
 0x35a   :  { %v919_v46 = vadd.f32 113.94838, %v893_v27  ;;  %v979_v0 = vsel %vm978_vm3, %v977_v17, %v972_v33 }
 0x35c   :  { %v984_v19 = vrot.slane %v919_v46, %v983_v35 }
 0x35d   :  { %v895_v22 = vpop.xlane.xlu0 %894 }
 0x35e   :  { %v920_v58 = vadd.f32 113.94838, %v895_v22  ;;  %v986_v29 = vsel %vm985_vm4, %v984_v19, %v979_v0 }
 0x360   :  { %v991_v34 = vrot.slane %v920_v58, %v990_v42 }
 0x361   :  { %v897_v26 = vpop.xlane.xlu1 %896 }
 0x362   :  { %v921_v61 = vadd.f32 113.94838, %v897_v26  ;;  %v993_v22 = vsel %vm992_vm5, %v991_v34, %v986_v29 }
 0x364   :  { %v998_v12 = vrot.slane %v921_v61, %v997_v44 }
 0x365   :  { %v899_v40 = vpop.xlane.xlu0 %898 }
 0x366   :  { %v922_v13 = vadd.f32 113.94838, %v899_v40  ;;  %v1000_v51 = vsel %vm999_vm6, %v998_v12, %v993_v22 }
 0x368   :  { %v1005_v11 = vrot.slane %v922_v13, %v1004_v47 }
 0x369   :  { %v901_v6 = vpop.xlane.xlu1 %900 }
 0x36a   :  { %v923_v18 = vadd.f32 113.94838, %v901_v6  ;;  %v1007_v28 = vsel %vm1006_vm7, %v1005_v11, %v1000_v51 }
 0x36c   :  { %v1012_v27 = vrot.slane %v923_v18, %v1011_v56 }
 0x36d   :  { %v903_v48 = vpop.xlane.xlu0 %902 }
 0x36e   :  { %v924_v10 = vadd.f32 113.94838, %v903_v48  ;;  %v1014_v30 = vsel %vm1013_vm8, %v1012_v27, %v1007_v28 }
 0x370   :  { %v1019_v23 = vrot.slane %v924_v10, %v1018_v4 }
 0x371   :  { %v905_v63 = vpop.xlane.xlu1 %904 }
 0x372   :  { %v925_v50 = vadd.f32 113.94838, %v905_v63  ;;  %v1021_v32 = vsel %vm1020_vm9, %v1019_v23, %v1014_v30 }
 0x374   :  { %v1026_v60 = vrot.slane %v925_v50, %v1025_v8 }
 0x375   :  { %v907_v9 = vpop.xlane.xlu0 %906 }
 0x376   :  { %v926_v15 = vadd.f32 113.94838, %v907_v9  ;;  %v1028_v35 = vsel %vm1027_vm10, %v1026_v60, %v1021_v32 }
 0x378   :  { %v1033_v25 = vrot.slane %v926_v15, %v1032_v41 }
 0x379   :  { %v909_v49 = vpop.xlane.xlu1 %908 }
 0x37a   :  { %v927_v20 = vadd.f32 113.94838, %v909_v49  ;;  %v1035_v37 = vsel %vm1034_vm11, %v1033_v25, %v1028_v35 }
 0x37c   :  { %v911_v62 = vpop.xlane.xlu0 %910  ;;  %v1040_v31 = vrot.slane %v927_v20, %v1039_v16 }
 0x37d   :  { %v928_v26 = vadd.f32 113.94838, %v911_v62 }
 0x37e   :  { %v1042_v38 = vsel %vm1041_vm12, %v1040_v31, %v1035_v37 }
 0x37f   :  { %v1047_v40 = vrot.slane %v928_v26, %v1046_v24 }
 0x380   :  { %v913_v39 = vpop.xlane.xlu1 %912 }
 0x381   :  { %v929_v36 = vadd.f32 113.94838, %v913_v39  ;;  %v1049_v6 = vsel %vm1048_vm13, %v1047_v40, %v1042_v38 }
 0x383   :  { %v1054_v42 = vrot.slane %v929_v36, %v1053_v14 }
 0x385   :  { %v1056_v2 = vsel %vm1055_vm14, %v1054_v42, %v1049_v6 }
 0x386   :  { %1058 = vst [vmem:[#allocation12] sm:$0x1] %v1056_v2 }
 0x387   :  { %1461 = shalt.err (!%p1458_p6)
}
 0x388   :  { %1080 = dma.vmem_to_hbm [thread:$0]  %s1078_s14, 16, %s1839_s9, [#allocation13]  }
 0x389   :  { %1476 = dma.done.wait [#allocation4], 2048  }
 0x38a   :  { %1477 = vsyncadd [#allocation4], 4294965248 }
 0x38b   :  { %1478 = dma.done.wait [#allocation13], 16  }
 0x38c   :  { %1479 = vsyncadd [#allocation13], 4294967280 }
 0x38d   :  { %1087 = vsyncpa [#allocation3], 1 }
 0x38e   :  { %1088 = vsyncpa [#allocation6], 1 }
 0x38f   :  { %1089 = vsyncpa [#allocation9], 1 }
 0x390   :  { %1090 = vsyncpa [#allocation4], 1 }
 0x391   :  { %1091 = vsyncpa [#allocation13], 1 }

// kernel: tpu_custom_call.1
= control target key start
LH: loop header
LB: loop body
LE: loop exit
PB: predicated region body
PF: predicated region fallthrough
CT: control target
= control target key end

     0   :  { %15 = vsyncpa [#allocation3], 0  ;;  %s1696_s0 = inlined_call_operand.hbm [shape: f32[128,128], index: 0, kind: input, shape index: {}]   ;;  %s1697_s1 = inlined_call_operand.hbm [shape: f32[128,128], index: 1, kind: input, shape index: {}]   ;;  %s1698_s2 = inlined_call_operand.vmem [shape: f32[1,128], index: 2, kind: input, shape index: {}]   ;;  %s1699_s3 = inlined_call_operand.hbm [shape: f32[128,128], index: 3, kind: input, shape index: {}]   ;;  %s1700_s4 = inlined_call_operand.vmem [shape: f32[1,128], index: 4, kind: input, shape index: {}]   ;;  %s1701_s5 = inlined_call_operand.hbm [shape: f32[128,256], index: 5, kind: input, shape index: {}]   ;;  %s1702_s6 = inlined_call_operand.vmem [shape: f32[1,256], index: 6, kind: input, shape index: {}]   ;;  %s1703_s7 = inlined_call_operand.hbm [shape: f32[128,128], index: 7, kind: input, shape index: {}]   ;;  %s1704_s8 = inlined_call_operand.hbm [shape: f32[128,128], index: 8, kind: output, shape index: {0}]   ;;  %s1705_s9 = inlined_call_operand.vmem [shape: f32[128,1], index: 9, kind: output, shape index: {1}]  }
   0x1   :  { %16 = vsyncpa [#allocation6], 0 }
   0x2   :  { %17 = vsyncpa [#allocation9], 0 }
   0x3   :  { %18 = vsyncpa [#allocation4], 0  ;;  %s1334_s30 = smov [#allocation5]   ;;  %s1335_s11 = smov [#allocation8]  }
   0x4   :  { %s36_s10 = sshll.u32 %s1334_s30, 4  ;;  %s64_s12 = sshll.u32 %s1335_s11, 4  ;;  %s37_s10 = int_to_ptr.vmem [resolvable:$true] %s36_s10  ;;  %s65_s12 = int_to_ptr.vmem [resolvable:$true] %s64_s12 }
   0x5   :  { %s1214_s13 = scalar_lea.vmem %s37_s10, 2048  ;;  %p1219_p1 = scmp.lt.s32.totalorder %s37_s10, %s37_s10 }
   0x6   :  { %p1215_p0 = scmp.ne.s32.totalorder %s37_s10, %s1214_s13  ;;  %p1220_p2 = scmp.lt.s32.totalorder %s1214_s13, %s1214_s13 }
   0x8   :  { %p1221_p3 = por %p1220_p2, %p1219_p1 }
   0xa   :  { %p1222_p4 = pnand %p1221_p3, %p1215_p0 }
   0xc   :  { %1225 = shalt.err (!%p1222_p4)
}
   0xd   :  { %s1336_s14 = smov 128   ;;  %s1337_s15 = smov 8  }
   0xe   :  { %42 = dma.hbm_to_vmem [thread:$0]  %s1697_s1, 2048, %s37_s10, [#allocation6], %s1336_s14, %s1336_s14, %s1337_s15  }
   0xf   :  { %s1234_s18 = scalar_lea.vmem %s65_s12, 4096  ;;  %p1239_p6 = scmp.lt.s32.totalorder %s65_s12, %s65_s12 }
  0x10   :  { %p1235_p5 = scmp.ne.s32.totalorder %s65_s12, %s1234_s18  ;;  %p1240_p7 = scmp.lt.s32.totalorder %s1234_s18, %s1234_s18 }
  0x12   :  { %p1241_p8 = por %p1240_p7, %p1239_p6 }
  0x14   :  { %p1242_p9 = pnand %p1241_p8, %p1235_p5 }
  0x16   :  { %1245 = shalt.err (!%p1242_p9)
}
  0x17   :  { %s1338_s19 = smov 256   ;;  %s1339_s20 = smov 16  }
  0x18   :  { %70 = dma.hbm_to_vmem [thread:$0]  %s1701_s5, 4096, %s65_s12, [#allocation9], %s1338_s19, %s1338_s19, %s1339_s20  }
  0x19   :  { %s1340_s23 = smov [#allocation2]   ;;  %s1341_s25 = smov [#allocation7]  }
  0x1a   :  { %s24_s24 = sshll.u32 %s1340_s23, 4  ;;  %s50_s26 = sshll.u32 %s1341_s25, 4  ;;  %s25_s24 = int_to_ptr.vmem [resolvable:$true] %s24_s24  ;;  %s51_s26 = int_to_ptr.vmem [resolvable:$true] %s50_s26 }
  0x1b   :  { %s1254_s1 = scalar_lea.vmem %s25_s24, 2048  ;;  %p1259_p11 = scmp.lt.s32.totalorder %s25_s24, %s25_s24 }
  0x1c   :  { %p1255_p10 = scmp.ne.s32.totalorder %s25_s24, %s1254_s1  ;;  %p1260_p12 = scmp.lt.s32.totalorder %s1254_s1, %s1254_s1 }
  0x1e   :  { %p1261_p13 = por %p1260_p12, %p1259_p11 }
  0x20   :  { %p1262_p0 = pnand %p1261_p13, %p1255_p10 }
  0x22   :  { %1265 = shalt.err (!%p1262_p0)
}
  0x23   :  { %30 = dma.hbm_to_vmem [thread:$0]  %s1696_s0, 2048, %s25_s24, [#allocation3], %s1336_s14, %s1336_s14, %s1337_s15  }
  0x24   :  { %s1274_s5 = scalar_lea.vmem %s51_s26, 2048  ;;  %p1279_p2 = scmp.lt.s32.totalorder %s51_s26, %s51_s26 }
  0x25   :  { %p1275_p1 = scmp.ne.s32.totalorder %s51_s26, %s1274_s5  ;;  %p1280_p3 = scmp.lt.s32.totalorder %s1274_s5, %s1274_s5 }
  0x27   :  { %p1281_p4 = por %p1280_p3, %p1279_p2 }
  0x29   :  { %p1282_p5 = pnand %p1281_p4, %p1275_p1 }
  0x2b   :  { %1285 = shalt.err (!%p1282_p5)
}
  0x2c   :  { %56 = dma.hbm_to_vmem [thread:$0]  %s1699_s3, 2048, %s51_s26, [#allocation6], %s1336_s14, %s1336_s14, %s1337_s15  }
  0x2d   :  { %s1342_s10 = smov [#allocation10]  }
  0x2e   :  { %s78_s11 = sshll.u32 %s1342_s10, 4  ;;  %s79_s11 = int_to_ptr.vmem [resolvable:$true] %s78_s11 }
  0x2f   :  { %s1294_s12 = scalar_lea.vmem %s79_s11, 2048  ;;  %p1299_p7 = scmp.lt.s32.totalorder %s79_s11, %s79_s11 }
  0x30   :  { %p1295_p6 = scmp.ne.s32.totalorder %s79_s11, %s1294_s12  ;;  %p1300_p8 = scmp.lt.s32.totalorder %s1294_s12, %s1294_s12 }
  0x32   :  { %p1301_p9 = por %p1300_p8, %p1299_p7 }
  0x34   :  { %p1302_p10 = pnand %p1301_p9, %p1295_p6 }
  0x36   :  { %1305 = shalt.err (!%p1302_p10)
}
  0x37   :  { %84 = dma.hbm_to_vmem [thread:$0]  %s1703_s7, 2048, %s79_s11, [#allocation9], %s1336_s14, %s1336_s14, %s1337_s15  }
  0x38   :  { %1326 = dma.done.wait [#allocation3], 2048  }
  0x39   :  { %1327 = vsyncadd [#allocation3], 4294965248 }
  0x3a   :  { %1328 = dma.done.wait [#allocation6], 4096  }
  0x3b   :  { %1329 = vsyncadd [#allocation6], 4294963200 }
  0x3c   :  { %1330 = dma.done.wait [#allocation9], 6144  }
  0x3d   :  { %1331 = vsyncadd [#allocation9], 4294961152  ;;  %v131_v0 = vld [vmem:[#allocation5 + $0x78] sm:$0xff]  ;;  %v130_v1 = vld [vmem:[#allocation5 + $0x70] sm:$0xff] }
  0x3e   :  { %1051 = vmatprep.subr.mxu1 %v131_v0  ;;  %v129_v2 = vld [vmem:[#allocation5 + $0x68] sm:$0xff]  ;;  %v128_v3 = vld [vmem:[#allocation5 + $0x60] sm:$0xff]  ;;  %v127_v5 = vld [vmem:[#allocation5 + $0x58] sm:$0xff] }
  0x3f   :  { %1052 = vmatpush3.msra.mxu1 %v131_v0  ;;  %v100_v4 = vld [vmem:[#allocation2] sm:$0xff]  ;;  %v126_v6 = vld [vmem:[#allocation5 + $0x50] sm:$0xff]  ;;  %v125_v7 = vld [vmem:[#allocation5 + $0x48] sm:$0xff] }
  0x40   :  { %1053 = vmatprep.subr.mxu1 %v130_v1  ;;  %1083 = vmatprep.mubr.f32.mxu1 %v100_v4  ;;  %v124_v8 = vld [vmem:[#allocation5 + $0x40] sm:$0xff]  ;;  %v123_v9 = vld [vmem:[#allocation5 + $0x38] sm:$0xff]  ;;  %v122_v10 = vld [vmem:[#allocation5 + $0x30] sm:$0xff] }
  0x41   :  { %1054 = vmatpush3.msra.mxu1 %v130_v1  ;;  %v121_v11 = vld [vmem:[#allocation5 + $0x28] sm:$0xff]  ;;  %v120_v12 = vld [vmem:[#allocation5 + $0x20] sm:$0xff]  ;;  %v119_v13 = vld [vmem:[#allocation5 + $0x18] sm:$0xff] }
  0x42   :  { %1055 = vmatprep.subr.mxu1 %v129_v2  ;;  %v118_v14 = vld [vmem:[#allocation5 + $0x10] sm:$0xff]  ;;  %v117_v15 = vld [vmem:[#allocation5 + $0x8] sm:$0xff]  ;;  %v116_v16 = vld [vmem:[#allocation5] sm:$0xff] }
  0x43   :  { %1056 = vmatpush3.msra.mxu1 %v129_v2  ;;  %v101_v17 = vld [vmem:[#allocation2 + $0x8] sm:$0xff]  ;;  %v315_v18 = vld [vmem:[#allocation7 + $0x78] sm:$0xff]  ;;  %v102_v19 = vld [vmem:[#allocation2 + $0x10] sm:$0xff] }
  0x44   :  { %1057 = vmatprep.subr.mxu1 %v128_v3  ;;  %v314_v20 = vld [vmem:[#allocation7 + $0x70] sm:$0xff]  ;;  %v103_v21 = vld [vmem:[#allocation2 + $0x18] sm:$0xff]  ;;  %v313_v22 = vld [vmem:[#allocation7 + $0x68] sm:$0xff] }
  0x45   :  { %1058 = vmatpush3.msra.mxu1 %v128_v3  ;;  %v104_v23 = vld [vmem:[#allocation2 + $0x20] sm:$0xff]  ;;  %v105_v25 = vld [vmem:[#allocation2 + $0x28] sm:$0xff]  ;;  %v311_v26 = vld [vmem:[#allocation7 + $0x58] sm:$0xff] }
  0x46   :  { %1059 = vmatprep.subr.mxu1 %v127_v5  ;;  %v312_v24 = vld [vmem:[#allocation7 + $0x60] sm:$0xff]  ;;  %v106_v27 = vld [vmem:[#allocation2 + $0x30] sm:$0xff]  ;;  %v107_v29 = vld [vmem:[#allocation2 + $0x38] sm:$0xff] }
  0x47   :  { %1060 = vmatpush3.msra.mxu1 %v127_v5  ;;  %v310_v28 = vld [vmem:[#allocation7 + $0x50] sm:$0xff]  ;;  %v309_v30 = vld [vmem:[#allocation7 + $0x48] sm:$0xff]  ;;  %v108_v31 = vld [vmem:[#allocation2 + $0x40] sm:$0xff] }
  0x48   :  { %1061 = vmatprep.subr.mxu1 %v126_v6  ;;  %v308_v32 = vld [vmem:[#allocation7 + $0x40] sm:$0xff]  ;;  %v109_v33 = vld [vmem:[#allocation2 + $0x48] sm:$0xff]  ;;  %v307_v34 = vld [vmem:[#allocation7 + $0x38] sm:$0xff] }
  0x49   :  { %1062 = vmatpush3.msra.mxu1 %v126_v6  ;;  %v110_v35 = vld [vmem:[#allocation2 + $0x50] sm:$0xff]  ;;  %v111_v37 = vld [vmem:[#allocation2 + $0x58] sm:$0xff]  ;;  %v305_v38 = vld [vmem:[#allocation7 + $0x28] sm:$0xff] }
  0x4a   :  { %1063 = vmatprep.subr.mxu1 %v125_v7  ;;  %v306_v36 = vld [vmem:[#allocation7 + $0x30] sm:$0xff]  ;;  %v112_v39 = vld [vmem:[#allocation2 + $0x60] sm:$0xff]  ;;  %v113_v41 = vld [vmem:[#allocation2 + $0x68] sm:$0xff] }
  0x4b   :  { %1064 = vmatpush3.msra.mxu1 %v125_v7  ;;  %v304_v40 = vld [vmem:[#allocation7 + $0x20] sm:$0xff]  ;;  %v303_v42 = vld [vmem:[#allocation7 + $0x18] sm:$0xff]  ;;  %v114_v43 = vld [vmem:[#allocation2 + $0x70] sm:$0xff] }
  0x4c   :  { %1065 = vmatprep.subr.mxu1 %v124_v8  ;;  %v115_v44 = vld [vmem:[#allocation2 + $0x78] sm:$0xff]  ;;  %v302_v45 = vld [vmem:[#allocation7 + $0x10] sm:$0xff]  ;;  %v301_v46 = vld [vmem:[#allocation7 + $0x8] sm:$0xff] }
  0x4d   :  { %1066 = vmatpush3.msra.mxu1 %v124_v8  ;;  %v300_v47 = vld [vmem:[#allocation7] sm:$0xff]  ;;  %v515_v48 = vld [vmem:[#allocation8 + $0xf8] sm:$0xff]  ;;  %v514_v49 = vld [vmem:[#allocation8 + $0xf0] sm:$0xff] }
  0x4e   :  { %1067 = vmatprep.subr.mxu1 %v123_v9  ;;  %v513_v50 = vld [vmem:[#allocation8 + $0xe8] sm:$0xff]  ;;  %528 = vmatprep.subr.mxu0 %v515_v48  ;;  %v512_v51 = vld [vmem:[#allocation8 + $0xe0] sm:$0xff]  ;;  %v511_v52 = vld [vmem:[#allocation8 + $0xd8] sm:$0xff] }
  0x4f   :  { %1068 = vmatpush3.msra.mxu1 %v123_v9  ;;  %529 = vmatpush1.msra.mxu0 %v514_v49  ;;  %v510_v53 = vld [vmem:[#allocation8 + $0xd0] sm:$0xff]  ;;  %v509_v54 = vld [vmem:[#allocation8 + $0xc8] sm:$0xff]  ;;  %v508_v55 = vld [vmem:[#allocation8 + $0xc0] sm:$0xff] }
  0x50   :  { %1069 = vmatprep.subr.mxu1 %v122_v10  ;;  %530 = vmatprep.subr.mxu0 %v513_v50  ;;  %v507_v56 = vld [vmem:[#allocation8 + $0xb8] sm:$0xff]  ;;  %v506_v57 = vld [vmem:[#allocation8 + $0xb0] sm:$0xff]  ;;  %v505_v58 = vld [vmem:[#allocation8 + $0xa8] sm:$0xff] }
  0x51   :  { %1070 = vmatpush3.msra.mxu1 %v122_v10  ;;  %531 = vmatpush1.msra.mxu0 %v512_v51  ;;  %v504_v59 = vld [vmem:[#allocation8 + $0xa0] sm:$0xff]  ;;  %v503_v60 = vld [vmem:[#allocation8 + $0x98] sm:$0xff]  ;;  %v502_v61 = vld [vmem:[#allocation8 + $0x90] sm:$0xff] }
  0x52   :  { %1071 = vmatprep.subr.mxu1 %v121_v11  ;;  %532 = vmatprep.subr.mxu0 %v511_v52  ;;  %v501_v62 = vld [vmem:[#allocation8 + $0x88] sm:$0xff]  ;;  %v500_v63 = vld [vmem:[#allocation8 + $0x80] sm:$0xff]  ;;  %v499_v0 = vld [vmem:[#allocation8 + $0x78] sm:$0xff] }
  0x53   :  { %1072 = vmatpush3.msra.mxu1 %v121_v11  ;;  %533 = vmatpush1.msra.mxu0 %v510_v53  ;;  %v498_v1 = vld [vmem:[#allocation8 + $0x70] sm:$0xff]  ;;  %v497_v2 = vld [vmem:[#allocation8 + $0x68] sm:$0xff]  ;;  %v496_v3 = vld [vmem:[#allocation8 + $0x60] sm:$0xff] }
  0x54   :  { %1073 = vmatprep.subr.mxu1 %v120_v12  ;;  %534 = vmatprep.subr.mxu0 %v509_v54  ;;  %v495_v4 = vld [vmem:[#allocation8 + $0x58] sm:$0xff]  ;;  %v494_v5 = vld [vmem:[#allocation8 + $0x50] sm:$0xff]  ;;  %v493_v6 = vld [vmem:[#allocation8 + $0x48] sm:$0xff] }
  0x55   :  { %1074 = vmatpush3.msra.mxu1 %v120_v12  ;;  %535 = vmatpush1.msra.mxu0 %v508_v55  ;;  %v492_v7 = vld [vmem:[#allocation8 + $0x40] sm:$0xff]  ;;  %v491_v8 = vld [vmem:[#allocation8 + $0x38] sm:$0xff] }
  0x56   :  { %1075 = vmatprep.subr.mxu1 %v119_v13  ;;  %536 = vmatprep.subr.mxu0 %v507_v56  ;;  %v969_v9 = vld [vmem:[%s1698_s2] ss:$0 sm:$0xff] }
  0x57   :  { %1076 = vmatpush3.msra.mxu1 %v119_v13  ;;  %537 = vmatpush1.msra.mxu0 %v506_v57 }
  0x58   :  { %1077 = vmatprep.subr.mxu1 %v118_v14  ;;  %538 = vmatprep.subr.mxu0 %v505_v58  ;;  %v490_v58 = vld [vmem:[#allocation8 + $0x30] sm:$0xff] }
  0x59   :  { %1078 = vmatpush3.msra.mxu1 %v118_v14  ;;  %539 = vmatpush1.msra.mxu0 %v504_v59  ;;  %v489_v59 = vld [vmem:[#allocation8 + $0x28] sm:$0xff] }
  0x5a   :  { %1079 = vmatprep.subr.mxu1 %v117_v15  ;;  %540 = vmatprep.subr.mxu0 %v503_v60  ;;  %v488_v60 = vld [vmem:[#allocation8 + $0x20] sm:$0xff] }
  0x5b   :  { %1080 = vmatpush3.msra.mxu1 %v117_v15  ;;  %541 = vmatpush1.msra.mxu0 %v502_v61  ;;  %v487_v61 = vld [vmem:[#allocation8 + $0x18] sm:$0xff] }
  0x5c   :  { %1081 = vmatprep.subr.mxu1 %v116_v16  ;;  %542 = vmatprep.subr.mxu0 %v501_v62  ;;  %v486_v62 = vld [vmem:[#allocation8 + $0x10] sm:$0xff] }
  0x5d   :  { %1082 = vmatpush3.msra.mxu1 %v116_v16  ;;  %543 = vmatpush1.msra.mxu0 %v500_v63  ;;  %v485_v63 = vld [vmem:[#allocation8 + $0x8] sm:$0xff] }
  0x5e   :  { %1084 = vmatmul.mubr.f32.vlgmr.msra.gmra.mxu1 %v101_v17  ;;  %1107 = vmatprep.subr.mxu1 %v315_v18 }
  0x5f   :  { %1086 = vmatprep.mubr.f32.mxu1 %v102_v19  ;;  %1108 = vmatpush3.msra.mxu1 %v315_v18 }
  0x60   :  { %1109 = vmatprep.subr.mxu1 %v314_v20  ;;  %544 = vmatprep.subr.mxu0 %v499_v0  ;;  %v484_v0 = vld [vmem:[#allocation8] sm:$0xff] }
  0x61   :  { %1110 = vmatpush3.msra.mxu1 %v314_v20  ;;  %545 = vmatpush1.msra.mxu0 %v498_v1  ;;  %v1343_v1 = vmov 0.0  }
  0x62   :  { %1087 = vmatmul.mubr.f32.gmra.mxu1 %v103_v21  ;;  %1111 = vmatprep.subr.mxu1 %v313_v22 }
  0x63   :  { %1089 = vmatprep.mubr.f32.mxu1 %v104_v23  ;;  %1112 = vmatpush3.msra.mxu1 %v313_v22 }
  0x64   :  { %1113 = vmatprep.subr.mxu1 %v312_v24  ;;  %546 = vmatprep.subr.mxu0 %v497_v2 }
  0x65   :  { %1114 = vmatpush3.msra.mxu1 %v312_v24  ;;  %547 = vmatpush1.msra.mxu0 %v496_v3  ;;  %v1429_v3 = vld [vmem:[%s1700_s4] ss:$0 sm:$0xff] }
  0x66   :  { %1090 = vmatmul.mubr.f32.gmra.mxu1 %v105_v25  ;;  %1115 = vmatprep.subr.mxu1 %v311_v26 }
  0x67   :  { %1092 = vmatprep.mubr.f32.mxu1 %v106_v27  ;;  %1116 = vmatpush3.msra.mxu1 %v311_v26 }
  0x68   :  { %1117 = vmatprep.subr.mxu1 %v310_v28  ;;  %548 = vmatprep.subr.mxu0 %v495_v4 }
  0x69   :  { %1118 = vmatpush3.msra.mxu1 %v310_v28  ;;  %549 = vmatpush1.msra.mxu0 %v494_v5 }
  0x6a   :  { %1093 = vmatmul.mubr.f32.gmra.mxu1 %v107_v29  ;;  %1119 = vmatprep.subr.mxu1 %v309_v30 }
  0x6b   :  { %1095 = vmatprep.mubr.f32.mxu1 %v108_v31  ;;  %1120 = vmatpush3.msra.mxu1 %v309_v30 }
  0x6c   :  { %1121 = vmatprep.subr.mxu1 %v308_v32  ;;  %550 = vmatprep.subr.mxu0 %v493_v6 }
  0x6d   :  { %1122 = vmatpush3.msra.mxu1 %v308_v32  ;;  %551 = vmatpush1.msra.mxu0 %v492_v7 }
  0x6e   :  { %1096 = vmatmul.mubr.f32.gmra.mxu1 %v109_v33  ;;  %1123 = vmatprep.subr.mxu1 %v307_v34 }
  0x6f   :  { %1098 = vmatprep.mubr.f32.mxu1 %v110_v35  ;;  %1124 = vmatpush3.msra.mxu1 %v307_v34 }
  0x70   :  { %1125 = vmatprep.subr.mxu1 %v306_v36  ;;  %552 = vmatprep.subr.mxu0 %v491_v8 }
  0x71   :  { %1126 = vmatpush3.msra.mxu1 %v306_v36  ;;  %553 = vmatpush1.msra.mxu0 %v490_v58 }
  0x72   :  { %1099 = vmatmul.mubr.f32.gmra.mxu1 %v111_v37  ;;  %1127 = vmatprep.subr.mxu1 %v305_v38 }
  0x73   :  { %1101 = vmatprep.mubr.f32.mxu1 %v112_v39  ;;  %1128 = vmatpush3.msra.mxu1 %v305_v38 }
  0x74   :  { %1129 = vmatprep.subr.mxu1 %v304_v40  ;;  %554 = vmatprep.subr.mxu0 %v489_v59 }
  0x75   :  { %1130 = vmatpush3.msra.mxu1 %v304_v40  ;;  %555 = vmatpush1.msra.mxu0 %v488_v60  ;;  %v1472_v60 = vld [vmem:[#allocation10 + $0x8] sm:$0xff] }
  0x76   :  { %1102 = vmatmul.mubr.f32.gmra.mxu1 %v113_v41  ;;  %1131 = vmatprep.subr.mxu1 %v303_v42 }
  0x77   :  { %1104 = vmatprep.mubr.f32.mxu1 %v114_v43  ;;  %1132 = vmatpush3.msra.mxu1 %v303_v42 }
  0x78   :  { %1133 = vmatprep.subr.mxu1 %v302_v45  ;;  %556 = vmatprep.subr.mxu0 %v487_v61 }
  0x79   :  { %1134 = vmatpush3.msra.mxu1 %v302_v45  ;;  %557 = vmatpush1.msra.mxu0 %v486_v62 }
  0x7a   :  { %1105 = vmatmul.mubr.f32.gmra.mxu1 %v115_v44  ;;  %1135 = vmatprep.subr.mxu1 %v301_v46 }
  0x7b   :  { %1136 = vmatpush3.msra.mxu1 %v301_v46  ;;  %558 = vmatprep.subr.mxu0 %v485_v63 }
  0x7c   :  { %1137 = vmatprep.subr.mxu1 %v300_v47  ;;  %559 = vmatpush1.msra.mxu0 %v484_v0 }
  0x7d   :  { %1138 = vmatpush3.msra.mxu1 %v300_v47  ;;  %592 = vmatprep.mubr.f32.mxu0 %v1343_v1 }
 0x11e   :  { %v1085_v10 = vpop.f32.mrf.mxu1 }
 0x11f   :  { %v211_v11 = vadd.f32 %v1085_v10, %v969_v9 }
 0x120   :  { %v205_v12 = vpop.f32.mrf.mxu1 }
 0x121   :  { %v206_v13 = vadd.f32 %v969_v9, %v205_v12  ;;  %v285_v17 = vmax.f32 %v211_v11, 0.0 }
 0x122   :  { %v1088_v14 = vpop.f32.mrf.mxu1 }
 0x123   :  { %v284_v15 = vmax.f32 %v206_v13, 0.0  ;;  %v221_v16 = vadd.f32 %v1088_v14, %v969_v9 }
 0x124   :  { %v215_v18 = vpop.f32.mrf.mxu1 }
 0x125   :  { %v216_v19 = vadd.f32 %v969_v9, %v215_v18  ;;  %1139 = vmatprep.mubr.f32.mxu1 %v284_v15  ;;  %v287_v20 = vmax.f32 %v221_v16, 0.0 }
 0x126   :  { %1140 = vmatmul.mubr.f32.vlgmr.msra.gmra.mxu1 %v285_v17  ;;  %v1091_v21 = vpop.f32.mrf.mxu1 }
 0x127   :  { %v286_v22 = vmax.f32 %v216_v19, 0.0  ;;  %v231_v23 = vadd.f32 %v1091_v21, %v969_v9 }
 0x128   :  { %v225_v24 = vpop.f32.mrf.mxu1 }
 0x129   :  { %1142 = vmatprep.mubr.f32.mxu1 %v286_v22  ;;  %v226_v25 = vadd.f32 %v969_v9, %v225_v24  ;;  %v289_v26 = vmax.f32 %v231_v23, 0.0 }
 0x12a   :  { %1143 = vmatmul.mubr.f32.gmra.mxu1 %v287_v20  ;;  %v1094_v27 = vpop.f32.mrf.mxu1 }
 0x12b   :  { %v288_v28 = vmax.f32 %v226_v25, 0.0  ;;  %v241_v29 = vadd.f32 %v1094_v27, %v969_v9 }
 0x12c   :  { %v235_v30 = vpop.f32.mrf.mxu1 }
 0x12d   :  { %1145 = vmatprep.mubr.f32.mxu1 %v288_v28  ;;  %v236_v31 = vadd.f32 %v969_v9, %v235_v30  ;;  %v291_v32 = vmax.f32 %v241_v29, 0.0 }
 0x12e   :  { %1146 = vmatmul.mubr.f32.gmra.mxu1 %v289_v26  ;;  %v1097_v33 = vpop.f32.mrf.mxu1 }
 0x12f   :  { %v290_v34 = vmax.f32 %v236_v31, 0.0  ;;  %v251_v35 = vadd.f32 %v1097_v33, %v969_v9 }
 0x130   :  { %v245_v36 = vpop.f32.mrf.mxu1 }
 0x131   :  { %1148 = vmatprep.mubr.f32.mxu1 %v290_v34  ;;  %v246_v37 = vadd.f32 %v969_v9, %v245_v36  ;;  %v293_v38 = vmax.f32 %v251_v35, 0.0 }
 0x132   :  { %1149 = vmatmul.mubr.f32.gmra.mxu1 %v291_v32  ;;  %v1100_v39 = vpop.f32.mrf.mxu1 }
 0x133   :  { %v292_v40 = vmax.f32 %v246_v37, 0.0  ;;  %v261_v41 = vadd.f32 %v1100_v39, %v969_v9 }
 0x134   :  { %v255_v42 = vpop.f32.mrf.mxu1 }
 0x135   :  { %1151 = vmatprep.mubr.f32.mxu1 %v292_v40  ;;  %v256_v43 = vadd.f32 %v969_v9, %v255_v42  ;;  %v295_v44 = vmax.f32 %v261_v41, 0.0 }
 0x136   :  { %1152 = vmatmul.mubr.f32.gmra.mxu1 %v293_v38  ;;  %v1103_v45 = vpop.f32.mrf.mxu1 }
 0x137   :  { %v294_v46 = vmax.f32 %v256_v43, 0.0  ;;  %v271_v47 = vadd.f32 %v1103_v45, %v969_v9 }
 0x138   :  { %v265_v48 = vpop.f32.mrf.mxu1 }
 0x139   :  { %1154 = vmatprep.mubr.f32.mxu1 %v294_v46  ;;  %v266_v49 = vadd.f32 %v969_v9, %v265_v48  ;;  %v297_v50 = vmax.f32 %v271_v47, 0.0 }
 0x13a   :  { %1155 = vmatmul.mubr.f32.gmra.mxu1 %v295_v44  ;;  %v1106_v51 = vpop.f32.mrf.mxu1 }
 0x13b   :  { %v296_v52 = vmax.f32 %v266_v49, 0.0  ;;  %v281_v53 = vadd.f32 %v1106_v51, %v969_v9  ;;  %v518_v51 = vlaneseq }
 0x13c   :  { %v275_v54 = vpop.f32.mrf.mxu1 }
 0x13d   :  { %1157 = vmatprep.mubr.f32.mxu1 %v296_v52  ;;  %v276_v55 = vadd.f32 %v969_v9, %v275_v54  ;;  %v299_v56 = vmax.f32 %v281_v53, 0.0  ;;  %v519_v52 = vshrl.u32 %v518_v51, 7  ;;  %v516_v54 = vld [vmem:[%s1702_s6] sm:$0x3]  ;;  %v1510_v51 = vld [vmem:[#allocation10 + $0x30] sm:$0xff]  ;;  %s1344_s6 = smov [#allocation11]  }
 0x13e   :  { %1158 = vmatmul.mubr.f32.gmra.mxu1 %v297_v50  ;;  %s951_s18 = sshll.u32 %s1344_s6, 4  ;;  %s952_s18 = int_to_ptr.vmem [resolvable:$true] %s951_s18 }
 0x13f   :  { %v298_v57 = vmax.f32 %v276_v55, 0.0  ;;  %v524_v53 = vsub.s32 1, %v519_v52  ;;  %v1465_v55 = vld [vmem:[#allocation10] sm:$0xff]  ;;  %s1306_s19 = scalar_lea.vmem %s952_s18, 2048  ;;  %p1311_p12 = scmp.lt.s32.totalorder %s952_s18, %s952_s18 }
 0x140   :  { %v817_v58 = vmul.f32 -0.5, %v1465_v55  ;;  %p1307_p11 = scmp.ne.s32.totalorder %s952_s18, %s1306_s19  ;;  %p1312_p13 = scmp.lt.s32.totalorder %s1306_s19, %s1306_s19 }
 0x141   :  { %1160 = vmatprep.mubr.f32.mxu1 %v298_v57 }
 0x142   :  { %1161 = vmatmul.mubr.f32.gmra.mxu1 %v299_v56  ;;  %v1467_v56 = vrot.slane %v516_v54, %v524_v53  ;;  %v833_v0 = vmul.f32 %v817_v58, %v1465_v55  ;;  %p1313_p0 = por %p1312_p13, %p1311_p12 }
 0x144   :  { %p1314_p1 = pnand %p1313_p0, %p1307_p11 }
 0x1e6   :  { %v1141_v2 = vpop.f32.mrf.mxu1 }
 0x1e7   :  { %v395_v7 = vadd.f32 %v1141_v2, %v1429_v3  ;;  %v1479_v2 = vld [vmem:[#allocation10 + $0x10] sm:$0xff] }
 0x1e8   :  { %v389_v4 = vpop.f32.mrf.mxu1 }
 0x1e9   :  { %v390_v5 = vadd.f32 %v1429_v3, %v389_v4  ;;  %v469_v10 = vmax.f32 %v395_v7, 0.0  ;;  %v819_v7 = vmul.f32 -0.5, %v1479_v2 }
 0x1ea   :  { %v1144_v6 = vpop.f32.mrf.mxu1 }
 0x1eb   :  { %v468_v8 = vmax.f32 %v390_v5, 0.0  ;;  %v405_v13 = vadd.f32 %v1144_v6, %v1429_v3 }
 0x1ec   :  { %v399_v9 = vpop.f32.mrf.mxu1 }
 0x1ed   :  { %593 = vmatmul.mubr.f32.vlgmr.msra.gmra.mxu0 %v468_v8  ;;  %v400_v11 = vadd.f32 %v1429_v3, %v399_v9  ;;  %v471_v16 = vmax.f32 %v405_v13, 0.0  ;;  %v1486_v13 = vld [vmem:[#allocation10 + $0x18] sm:$0xff] }
 0x1ee   :  { %598 = vmatprep.mubr.f32.mxu0 %v1343_v1  ;;  %v1147_v12 = vpop.f32.mrf.mxu1 }
 0x1ef   :  { %v470_v14 = vmax.f32 %v400_v11, 0.0  ;;  %v415_v19 = vadd.f32 %v1147_v12, %v1429_v3 }
 0x1f0   :  { %v409_v15 = vpop.f32.mrf.mxu1 }
 0x1f1   :  { %599 = vmatmul.mubr.f32.gmra.mxu0 %v469_v10  ;;  %v410_v17 = vadd.f32 %v1429_v3, %v409_v15  ;;  %v473_v22 = vmax.f32 %v415_v19, 0.0 }
 0x1f2   :  { %604 = vmatprep.mubr.f32.mxu0 %v1343_v1  ;;  %v1150_v18 = vpop.f32.mrf.mxu1 }
 0x1f3   :  { %v472_v20 = vmax.f32 %v410_v17, 0.0  ;;  %v425_v25 = vadd.f32 %v1150_v18, %v1429_v3  ;;  %v835_v18 = vmul.f32 %v819_v7, %v1479_v2 }
 0x1f4   :  { %v419_v21 = vpop.f32.mrf.mxu1 }
 0x1f5   :  { %605 = vmatmul.mubr.f32.gmra.mxu0 %v470_v14  ;;  %v420_v23 = vadd.f32 %v1429_v3, %v419_v21  ;;  %v475_v28 = vmax.f32 %v425_v25, 0.0 }
 0x1f6   :  { %610 = vmatprep.mubr.f32.mxu0 %v1343_v1  ;;  %v1153_v24 = vpop.f32.mrf.mxu1 }
 0x1f7   :  { %v474_v26 = vmax.f32 %v420_v23, 0.0  ;;  %v435_v31 = vadd.f32 %v1153_v24, %v1429_v3 }
 0x1f8   :  { %v429_v27 = vpop.f32.mrf.mxu1 }
 0x1f9   :  { %611 = vmatmul.mubr.f32.gmra.mxu0 %v471_v16  ;;  %v430_v29 = vadd.f32 %v1429_v3, %v429_v27  ;;  %v477_v34 = vmax.f32 %v435_v31, 0.0  ;;  %v1494_v27 = vld [vmem:[#allocation10 + $0x20] sm:$0xff] }
 0x1fa   :  { %616 = vmatprep.mubr.f32.mxu0 %v1343_v1  ;;  %v1156_v30 = vpop.f32.mrf.mxu1 }
 0x1fb   :  { %v476_v32 = vmax.f32 %v430_v29, 0.0  ;;  %v445_v37 = vadd.f32 %v1156_v30, %v1429_v3 }
 0x1fc   :  { %v439_v33 = vpop.f32.mrf.mxu1 }
 0x1fd   :  { %617 = vmatmul.mubr.f32.gmra.mxu0 %v472_v20  ;;  %v440_v35 = vadd.f32 %v1429_v3, %v439_v33  ;;  %v479_v40 = vmax.f32 %v445_v37, 0.0 }
 0x1fe   :  { %622 = vmatprep.mubr.f32.mxu0 %v1343_v1  ;;  %v1159_v36 = vpop.f32.mrf.mxu1 }
 0x1ff   :  { %v478_v38 = vmax.f32 %v440_v35, 0.0  ;;  %v455_v43 = vadd.f32 %v1159_v36, %v1429_v3  ;;  %v821_v35 = vmul.f32 -0.5, %v1494_v27 }
 0x200   :  { %v449_v39 = vpop.f32.mrf.mxu1 }
 0x201   :  { %623 = vmatmul.mubr.f32.gmra.mxu0 %v473_v22  ;;  %v450_v41 = vadd.f32 %v1429_v3, %v449_v39  ;;  %v481_v46 = vmax.f32 %v455_v43, 0.0  ;;  %v820_v22 = vmul.f32 -0.5, %v1486_v13  ;;  %v1501_v39 = vld [vmem:[#allocation10 + $0x28] sm:$0xff] }
 0x202   :  { %628 = vmatprep.mubr.f32.mxu0 %v1343_v1  ;;  %v1162_v42 = vpop.f32.mrf.mxu1 }
 0x203   :  { %v480_v44 = vmax.f32 %v450_v41, 0.0  ;;  %v465_v48 = vadd.f32 %v1162_v42, %v1429_v3  ;;  %v836_v33 = vmul.f32 %v820_v22, %v1486_v13 }
 0x204   :  { %v459_v45 = vpop.f32.mrf.mxu1 }
 0x205   :  { %629 = vmatmul.mubr.f32.gmra.mxu0 %v474_v26  ;;  %v460_v47 = vadd.f32 %v1429_v3, %v459_v45  ;;  %v483_v50 = vmax.f32 %v465_v48, 0.0 }
 0x206   :  { %634 = vmatprep.mubr.f32.mxu0 %v1343_v1 }
 0x207   :  { %v482_v49 = vmax.f32 %v460_v47, 0.0  ;;  %v822_v47 = vmul.f32 -0.5, %v1501_v39 }
 0x209   :  { %635 = vmatmul.mubr.f32.gmra.mxu0 %v475_v28  ;;  %v520_v28 = vsub.s32 0, %v519_v52 }
 0x20a   :  { %640 = vmatprep.mubr.f32.mxu0 %v1343_v1 }
 0x20b   :  { %v1505_v41 = vrot.slane %v516_v54, %v520_v28 }
 0x20d   :  { %641 = vmatmul.mubr.f32.gmra.mxu0 %v476_v32 }
 0x20e   :  { %646 = vmatprep.mubr.f32.mxu0 %v1343_v1 }
 0x211   :  { %647 = vmatmul.mubr.f32.gmra.mxu0 %v477_v34 }
 0x212   :  { %652 = vmatprep.mubr.f32.mxu0 %v1343_v1 }
 0x215   :  { %653 = vmatmul.mubr.f32.gmra.mxu0 %v478_v38 }
 0x216   :  { %658 = vmatprep.mubr.f32.mxu0 %v1343_v1 }
 0x219   :  { %659 = vmatmul.mubr.f32.gmra.mxu0 %v479_v40 }
 0x21a   :  { %664 = vmatprep.mubr.f32.mxu0 %v1343_v1 }
 0x21d   :  { %665 = vmatmul.mubr.f32.gmra.mxu0 %v480_v44 }
 0x21e   :  { %670 = vmatprep.mubr.f32.mxu0 %v1343_v1 }
 0x221   :  { %671 = vmatmul.mubr.f32.gmra.mxu0 %v481_v46  ;;  %v837_v46 = vmul.f32 %v821_v35, %v1494_v27 }
 0x222   :  { %676 = vmatprep.mubr.f32.mxu0 %v1343_v1 }
 0x225   :  { %677 = vmatmul.mubr.f32.gmra.mxu0 %v482_v49 }
 0x226   :  { %682 = vmatprep.mubr.f32.mxu0 %v1343_v1  ;;  %v818_v1 = vmul.f32 -0.5, %v1472_v60 }
 0x228   :  { %v834_v11 = vmul.f32 %v818_v1, %v1472_v60  ;;  %v838_v1 = vmul.f32 %v822_v47, %v1501_v39 }
 0x229   :  { %683 = vmatmul.mubr.f32.gmra.mxu0 %v483_v50 }
 0x2ad   :  { %v1469_v57 = vpop.f32.mrf.mxu0 }
 0x2ae   :  { %v595_v54 = vadd.f32 %v1469_v57, %v1505_v41 }
 0x2af   :  { %v596_v59 = vpop.f32.mrf.mxu0 }
 0x2b0   :  { %v597_v61 = vadd.f32 %v596_v59, %v1467_v56 }
 0x2b1   :  { %v1475_v62 = vpop.f32.mrf.mxu0 }
 0x2b2   :  { %v689_v63 = vmax.f32 %v597_v61, -20.0 }
 0x2b3   :  { %v602_v3 = vpop.f32.mrf.mxu0 }
 0x2b4   :  { %v705_v4 = vmin.f32 %v689_v63, 2.0  ;;  %v603_v5 = vadd.f32 %v602_v3, %v1467_v56  ;;  %v823_v3 = vmul.f32 -0.5, %v1510_v51 }
 0x2b5   :  { %v1482_v6 = vpop.f32.mrf.mxu0 }
 0x2b6   :  { %v721_v8 = vmul.f32 1.442695, %v705_v4  ;;  %v690_v9 = vmax.f32 %v603_v5, -20.0  ;;  %v849_v10 = vsub.f32 %v833_v0, %v705_v4 }
 0x2b7   :  { %v608_v12 = vpop.f32.mrf.mxu0 }
 0x2b8   :  { %1174 = vpow2.f32 %v721_v8  ;;  %v706_v14 = vmin.f32 %v690_v9, 2.0  ;;  %v609_v15 = vadd.f32 %v608_v12, %v1467_v56  ;;  %v971_v16 = vadd.f32 -0.9189385, %v849_v10  ;;  %v1520_v8 = vld [vmem:[#allocation10 + $0x38] sm:$0xff] }
 0x2b9   :  { %v1489_v17 = vpop.f32.mrf.mxu0  ;;  %v601_v10 = vadd.f32 %v1475_v62, %v1505_v41 }
 0x2ba   :  { %v723_v19 = vmul.f32 1.442695, %v706_v14  ;;  %v691_v20 = vmax.f32 %v609_v15, -20.0  ;;  %881 = vadd.xlane.f32.xlu0 %v971_v16  ;;  %v850_v21 = vsub.f32 %v834_v11, %v706_v14 }
 0x2bb   :  { %v614_v23 = vpop.f32.mrf.mxu0 }
 0x2bc   :  { %1176 = vpow2.f32 %v723_v19  ;;  %v707_v24 = vmin.f32 %v691_v20, 2.0  ;;  %v615_v25 = vadd.f32 %v614_v23, %v1467_v56  ;;  %v972_v26 = vadd.f32 -0.9189385, %v850_v21  ;;  %v1530_v23 = vld [vmem:[#allocation10 + $0x40] sm:$0xff] }
 0x2bd   :  { %v1496_v29 = vpop.f32.mrf.mxu0  ;;  %v824_v19 = vmul.f32 -0.5, %v1520_v8 }
 0x2be   :  { %v725_v30 = vmul.f32 1.442695, %v707_v24  ;;  %v692_v31 = vmax.f32 %v615_v25, -20.0  ;;  %883 = vadd.xlane.f32.xlu0 %v972_v26  ;;  %v851_v32 = vsub.f32 %v835_v18, %v707_v24  ;;  %v839_v18 = vmul.f32 %v823_v3, %v1510_v51 }
 0x2bf   :  { %v620_v34 = vpop.f32.mrf.mxu0  ;;  %v607_v25 = vadd.f32 %v1482_v6, %v1505_v41 }
 0x2c0   :  { %1178 = vpow2.f32 %v725_v30  ;;  %v708_v36 = vmin.f32 %v692_v31, 2.0  ;;  %v621_v37 = vadd.f32 %v620_v34, %v1467_v56  ;;  %v973_v38 = vadd.f32 -0.9189385, %v851_v32 }
 0x2c1   :  { %v1503_v40 = vpop.f32.mrf.mxu0  ;;  %v825_v34 = vmul.f32 -0.5, %v1530_v23 }
 0x2c2   :  { %v727_v42 = vmul.f32 1.442695, %v708_v36  ;;  %v693_v43 = vmax.f32 %v621_v37, -20.0  ;;  %885 = vadd.xlane.f32.xlu1 %v973_v38  ;;  %v852_v44 = vsub.f32 %v836_v33, %v708_v36  ;;  %v840_v33 = vmul.f32 %v824_v19, %v1520_v8  ;;  %v1540_v38 = vld [vmem:[#allocation10 + $0x48] sm:$0xff] }
 0x2c3   :  { %v626_v45 = vpop.f32.mrf.mxu0 }
 0x2c4   :  { %1180 = vpow2.f32 %v727_v42  ;;  %v709_v48 = vmin.f32 %v693_v43, 2.0  ;;  %v627_v49 = vadd.f32 %v626_v45, %v1467_v56  ;;  %v974_v50 = vadd.f32 -0.9189385, %v852_v44 }
 0x2c5   :  { %v1175_v52 = vpop.eup %1174  ;;  %v1512_v53 = vpop.f32.mrf.mxu0  ;;  %v613_v43 = vadd.f32 %v1489_v17, %v1505_v41 }
 0x2c6   :  { %v769_v58 = vmul.f32 %v1175_v52, %v1465_v55  ;;  %v729_v59 = vmul.f32 1.442695, %v709_v48  ;;  %v694_v61 = vmax.f32 %v627_v49, -20.0  ;;  %887 = vadd.xlane.f32.xlu1 %v974_v50  ;;  %v853_v0 = vsub.f32 %v837_v46, %v709_v48 }
 0x2c7   :  { %v632_v63 = vpop.f32.mrf.mxu0  ;;  %v841_v49 = vmul.f32 %v825_v34, %v1530_v23  ;;  %v826_v50 = vmul.f32 -0.5, %v1540_v38 }
 0x2c8   :  { %v785_v4 = vadd.f32 %v769_v58, %v595_v54  ;;  %1182 = vpow2.f32 %v729_v59  ;;  %v710_v5 = vmin.f32 %v694_v61, 2.0  ;;  %v633_v7 = vadd.f32 %v632_v63, %v1467_v56  ;;  %v1550_v59 = vld [vmem:[#allocation10 + $0x50] sm:$0xff] }
 0x2c9   :  { %v1177_v9 = vpop.eup %1176  ;;  %v1522_v57 = vpop.f32.mrf.mxu0  ;;  %v975_v55 = vadd.f32 -0.9189385, %v853_v0  ;;  %v619_v63 = vadd.f32 %v1496_v29, %v1505_v41 }
 0x2ca   :  { %801 = vst [vmem:[#allocation11] sm:$0xff] %v785_v4  ;;  %v770_v11 = vmul.f32 %v1177_v9, %v1472_v60  ;;  %v731_v12 = vmul.f32 1.442695, %v710_v5  ;;  %v695_v14 = vmax.f32 %v633_v7, -20.0  ;;  %v854_v16 = vsub.f32 %v838_v1, %v710_v5 }
 0x2cb   :  { %889 = vadd.xlane.f32.xlu0 %v975_v55  ;;  %v638_v15 = vpop.f32.mrf.mxu0  ;;  %v842_v7 = vmul.f32 %v826_v50, %v1540_v38  ;;  %v827_v9 = vmul.f32 -0.5, %v1550_v59 }
 0x2cc   :  { %v786_v20 = vadd.f32 %v770_v11, %v601_v10  ;;  %1184 = vpow2.f32 %v731_v12  ;;  %v711_v21 = vmin.f32 %v695_v14, 2.0  ;;  %v639_v22 = vadd.f32 %v638_v15, %v1467_v56  ;;  %v1560_v12 = vld [vmem:[#allocation10 + $0x58] sm:$0xff] }
 0x2cd   :  { %v1179_v62 = vpop.eup %1178  ;;  %v1532_v24 = vpop.f32.mrf.mxu0  ;;  %v976_v60 = vadd.f32 -0.9189385, %v854_v16  ;;  %v625_v15 = vadd.f32 %v1503_v40, %v1505_v41 }
 0x2ce   :  { %802 = vst [vmem:[#allocation11 + $0x8] sm:$0xff] %v786_v20  ;;  %v771_v26 = vmul.f32 %v1179_v62, %v1479_v2  ;;  %v733_v28 = vmul.f32 1.442695, %v711_v21  ;;  %v696_v30 = vmax.f32 %v639_v22, -20.0  ;;  %v855_v32 = vsub.f32 %v839_v18, %v711_v21 }
 0x2cf   :  { %891 = vadd.xlane.f32.xlu1 %v976_v60  ;;  %v644_v31 = vpop.f32.mrf.mxu0  ;;  %v843_v22 = vmul.f32 %v827_v9, %v1550_v59  ;;  %v828_v62 = vmul.f32 -0.5, %v1560_v12 }
 0x2d0   :  { %v787_v35 = vadd.f32 %v771_v26, %v607_v25  ;;  %1186 = vpow2.f32 %v733_v28  ;;  %v712_v36 = vmin.f32 %v696_v30, 2.0  ;;  %v645_v37 = vadd.f32 %v644_v31, %v1467_v56  ;;  %v1570_v28 = vld [vmem:[#allocation10 + $0x60] sm:$0xff] }
 0x2d1   :  { %v1181_v6 = vpop.eup %1180  ;;  %v1542_v42 = vpop.f32.mrf.mxu0  ;;  %v977_v2 = vadd.f32 -0.9189385, %v855_v32  ;;  %v631_v31 = vadd.f32 %v1512_v53, %v1505_v41 }
 0x2d2   :  { %803 = vst [vmem:[#allocation11 + $0x10] sm:$0xff] %v787_v35  ;;  %v772_v44 = vmul.f32 %v1181_v6, %v1486_v13  ;;  %v735_v45 = vmul.f32 1.442695, %v712_v36  ;;  %v697_v46 = vmax.f32 %v645_v37, -20.0  ;;  %v856_v48 = vsub.f32 %v840_v33, %v712_v36 }
 0x2d3   :  { %893 = vadd.xlane.f32.xlu0 %v977_v2  ;;  %v650_v47 = vpop.f32.mrf.mxu0  ;;  %v844_v37 = vmul.f32 %v828_v62, %v1560_v12  ;;  %v829_v6 = vmul.f32 -0.5, %v1570_v28 }
 0x2d4   :  { %v788_v52 = vadd.f32 %v772_v44, %v613_v43  ;;  %1188 = vpow2.f32 %v735_v45  ;;  %v713_v54 = vmin.f32 %v697_v46, 2.0  ;;  %v651_v58 = vadd.f32 %v650_v47, %v1467_v56  ;;  %v1580_v45 = vld [vmem:[#allocation10 + $0x68] sm:$0xff] }
 0x2d5   :  { %v1183_v17 = vpop.eup %1182  ;;  %v1552_v61 = vpop.f32.mrf.mxu0  ;;  %v978_v13 = vadd.f32 -0.9189385, %v856_v48  ;;  %v637_v47 = vadd.f32 %v1522_v57, %v1505_v41 }
 0x2d6   :  { %804 = vst [vmem:[#allocation11 + $0x18] sm:$0xff] %v788_v52  ;;  %v773_v0 = vmul.f32 %v1183_v17, %v1494_v27  ;;  %v737_v1 = vmul.f32 1.442695, %v713_v54  ;;  %v698_v3 = vmax.f32 %v651_v58, -20.0  ;;  %v857_v5 = vsub.f32 %v841_v49, %v713_v54  ;;  %v1587_v52 = vld [vmem:[#allocation10 + $0x70] sm:$0xff] }
 0x2d7   :  { %895 = vadd.xlane.f32.xlu1 %v978_v13  ;;  %v656_v4 = vpop.f32.mrf.mxu0  ;;  %v845_v17 = vmul.f32 %v829_v6, %v1570_v28  ;;  %v830_v13 = vmul.f32 -0.5, %v1580_v45 }
 0x2d8   :  { %v789_v55 = vadd.f32 %v773_v0, %v619_v63  ;;  %1190 = vpow2.f32 %v737_v1  ;;  %v714_v10 = vmin.f32 %v698_v3, 2.0  ;;  %v657_v11 = vadd.f32 %v656_v4, %v1467_v56 }
 0x2d9   :  { %v1185_v29 = vpop.eup %1184  ;;  %v1562_v14 = vpop.f32.mrf.mxu0  ;;  %v979_v27 = vadd.f32 -0.9189385, %v857_v5  ;;  %v831_v4 = vmul.f32 -0.5, %v1587_v52  ;;  %v643_v5 = vadd.f32 %v1532_v24, %v1505_v41 }
 0x2da   :  { %805 = vst [vmem:[#allocation11 + $0x20] sm:$0xff] %v789_v55  ;;  %v774_v16 = vmul.f32 %v1185_v29, %v1501_v39  ;;  %v739_v18 = vmul.f32 1.442695, %v714_v10  ;;  %v699_v19 = vmax.f32 %v657_v11, -20.0  ;;  %v858_v21 = vsub.f32 %v842_v7, %v714_v10  ;;  %v1598_v10 = vld [vmem:[#allocation10 + $0x78] sm:$0xff] }
 0x2db   :  { %897 = vadd.xlane.f32.xlu0 %v979_v27  ;;  %v662_v20 = vpop.f32.mrf.mxu0  ;;  %v846_v27 = vmul.f32 %v830_v13, %v1580_v45 }
 0x2dc   :  { %v790_v60 = vadd.f32 %v774_v16, %v625_v15  ;;  %1192 = vpow2.f32 %v739_v18  ;;  %v715_v25 = vmin.f32 %v699_v19, 2.0  ;;  %v663_v26 = vadd.f32 %v662_v20, %v1467_v56 }
 0x2dd   :  { %v1187_v40 = vpop.eup %1186  ;;  %v1572_v30 = vpop.f32.mrf.mxu0  ;;  %v980_v39 = vadd.f32 -0.9189385, %v858_v21  ;;  %v847_v21 = vmul.f32 %v831_v4, %v1587_v52 }
 0x2de   :  { %806 = vst [vmem:[#allocation11 + $0x28] sm:$0xff] %v790_v60  ;;  %v775_v32 = vmul.f32 %v1187_v40, %v1510_v51  ;;  %v741_v33 = vmul.f32 1.442695, %v715_v25  ;;  %v700_v34 = vmax.f32 %v663_v26, -20.0  ;;  %v859_v36 = vsub.f32 %v843_v22, %v715_v25 }
 0x2df   :  { %899 = vadd.xlane.f32.xlu1 %v980_v39  ;;  %v668_v35 = vpop.f32.mrf.mxu0  ;;  %v649_v22 = vadd.f32 %v1542_v42, %v1505_v41 }
 0x2e0   :  { %v791_v2 = vadd.f32 %v775_v32, %v631_v31  ;;  %1194 = vpow2.f32 %v741_v33  ;;  %v716_v43 = vmin.f32 %v700_v34, 2.0  ;;  %v669_v44 = vadd.f32 %v668_v35, %v1467_v56 }
 0x2e1   :  { %v1189_v53 = vpop.eup %1188  ;;  %v1582_v46 = vpop.f32.mrf.mxu0  ;;  %v981_v51 = vadd.f32 -0.9189385, %v859_v36  ;;  %v655_v34 = vadd.f32 %v1552_v61, %v1505_v41 }
 0x2e2   :  { %807 = vst [vmem:[#allocation11 + $0x30] sm:$0xff] %v791_v2  ;;  %v776_v48 = vmul.f32 %v1189_v53, %v1520_v8  ;;  %v743_v49 = vmul.f32 1.442695, %v716_v43  ;;  %v701_v50 = vmax.f32 %v669_v44, -20.0  ;;  %v860_v58 = vsub.f32 %v844_v37, %v716_v43 }
 0x2e3   :  { %901 = vadd.xlane.f32.xlu0 %v981_v51  ;;  %v674_v54 = vpop.f32.mrf.mxu0 }
 0x2e4   :  { %v792_v63 = vadd.f32 %v776_v48, %v637_v47  ;;  %1196 = vpow2.f32 %v743_v49  ;;  %v717_v0 = vmin.f32 %v701_v50, 2.0  ;;  %v675_v1 = vadd.f32 %v674_v54, %v1467_v56 }
 0x2e5   :  { %v1191_v57 = vpop.eup %1190  ;;  %v1592_v3 = vpop.f32.mrf.mxu0  ;;  %v982_v8 = vadd.f32 -0.9189385, %v860_v58  ;;  %v667_v50 = vadd.f32 %v1572_v30, %v1505_v41 }
 0x2e6   :  { %808 = vst [vmem:[#allocation11 + $0x38] sm:$0xff] %v792_v63  ;;  %v777_v7 = vmul.f32 %v1191_v57, %v1530_v23  ;;  %v745_v9 = vmul.f32 1.442695, %v717_v0  ;;  %v702_v55 = vmax.f32 %v675_v1, -20.0  ;;  %v861_v29 = vsub.f32 %v845_v17, %v717_v0 }
 0x2e7   :  { %903 = vadd.xlane.f32.xlu1 %v982_v8  ;;  %v680_v11 = vpop.f32.mrf.mxu0  ;;  %v832_v23 = vmul.f32 -0.5, %v1598_v10  ;;  %v679_v0 = vadd.f32 %v1592_v3, %v1505_v41 }
 0x2e8   :  { %v793_v15 = vadd.f32 %v777_v7, %v643_v5  ;;  %1198 = vpow2.f32 %v745_v9  ;;  %v718_v16 = vmin.f32 %v702_v55, 2.0  ;;  %v681_v18 = vadd.f32 %v680_v11, %v1467_v56 }
 0x2e9   :  { %v1193_v19 = vpop.eup %1192  ;;  %v684_v20 = vpop.f32.mrf.mxu0  ;;  %v983_v24 = vadd.f32 -0.9189385, %v861_v29  ;;  %v848_v42 = vmul.f32 %v832_v23, %v1598_v10 }
 0x2ea   :  { %809 = vst [vmem:[#allocation11 + $0x40] sm:$0xff] %v793_v15  ;;  %v778_v62 = vmul.f32 %v1193_v19, %v1540_v38  ;;  %v747_v60 = vmul.f32 1.442695, %v718_v16  ;;  %v703_v25 = vmax.f32 %v681_v18, -20.0  ;;  %v862_v40 = vsub.f32 %v846_v27, %v718_v16 }
 0x2eb   :  { %905 = vadd.xlane.f32.xlu0 %v983_v24  ;;  %v686_v26 = vpop.f32.mrf.mxu0 }
 0x2ec   :  { %v794_v39 = vadd.f32 %v778_v62, %v649_v22  ;;  %1200 = vpow2.f32 %v747_v60  ;;  %v719_v31 = vmin.f32 %v703_v25, 2.0  ;;  %v687_v32 = vadd.f32 %v686_v26, %v1467_v56 }
 0x2ed   :  { %v1195_v33 = vpop.eup %1194  ;;  %v984_v35 = vadd.f32 -0.9189385, %v862_v40  ;;  %v661_v56 = vadd.f32 %v1562_v14, %v1505_v41  ;;  %v673_v14 = vadd.f32 %v1582_v46, %v1505_v41 }
 0x2ee   :  { %810 = vst [vmem:[#allocation11 + $0x48] sm:$0xff] %v794_v39  ;;  %v779_v38 = vmul.f32 %v1195_v33, %v1550_v59  ;;  %v749_v36 = vmul.f32 1.442695, %v719_v31  ;;  %v704_v37 = vmax.f32 %v687_v32, -20.0  ;;  %v863_v6 = vsub.f32 %v847_v21, %v719_v31 }
 0x2ef   :  { %907 = vadd.xlane.f32.xlu1 %v984_v35 }
 0x2f0   :  { %v795_v2 = vadd.f32 %v779_v38, %v655_v34  ;;  %1202 = vpow2.f32 %v749_v36  ;;  %v720_v43 = vmin.f32 %v704_v37, 2.0  ;;  %v985_v44 = vadd.f32 -0.9189385, %v863_v6 }
 0x2f1   :  { %v1197_v53 = vpop.eup %1196 }
 0x2f2   :  { %811 = vst [vmem:[#allocation11 + $0x50] sm:$0xff] %v795_v2  ;;  %v780_v61 = vmul.f32 %v1197_v53, %v1560_v12  ;;  %v751_v51 = vmul.f32 1.442695, %v720_v43  ;;  %909 = vadd.xlane.f32.xlu0 %v985_v44  ;;  %v864_v47 = vsub.f32 %v848_v42, %v720_v43 }
 0x2f4   :  { %v796_v48 = vadd.f32 %v780_v61, %v661_v56  ;;  %1204 = vpow2.f32 %v751_v51  ;;  %v986_v59 = vadd.f32 -0.9189385, %v864_v47 }
 0x2f5   :  { %v1199_v49 = vpop.eup %1198 }
 0x2f6   :  { %812 = vst [vmem:[#allocation11 + $0x58] sm:$0xff] %v796_v48  ;;  %v781_v54 = vmul.f32 %v1199_v49, %v1570_v28  ;;  %911 = vadd.xlane.f32.xlu1 %v986_v59  ;;  %v685_v28 = vadd.f32 %v684_v20, %v1505_v41 }
 0x2f8   :  { %v797_v58 = vadd.f32 %v781_v54, %v667_v50 }
 0x2f9   :  { %v1201_v17 = vpop.eup %1200 }
 0x2fa   :  { %813 = vst [vmem:[#allocation11 + $0x60] sm:$0xff] %v797_v58  ;;  %v782_v12 = vmul.f32 %v1201_v17, %v1580_v45 }
 0x2fc   :  { %v798_v13 = vadd.f32 %v782_v12, %v673_v14 }
 0x2fd   :  { %v1203_v63 = vpop.eup %1202 }
 0x2fe   :  { %814 = vst [vmem:[#allocation11 + $0x68] sm:$0xff] %v798_v13  ;;  %v783_v30 = vmul.f32 %v1203_v63, %v1587_v52 }
 0x300   :  { %v799_v1 = vadd.f32 %v783_v30, %v679_v0 }
 0x301   :  { %v1205_v57 = vpop.eup %1204 }
 0x302   :  { %815 = vst [vmem:[#allocation11 + $0x70] sm:$0xff] %v799_v1  ;;  %v784_v46 = vmul.f32 %v1205_v57, %v1598_v10 }
 0x304   :  { %v800_v8 = vadd.f32 %v784_v46, %v685_v28 }
 0x306   :  { %816 = vst [vmem:[#allocation11 + $0x78] sm:$0xff] %v800_v8 }
 0x307   :  { %1317 = shalt.err (!%p1314_p1)
}
 0x308   :  { %957 = dma.vmem_to_hbm [thread:$0]  %s952_s18, 2048, %s1704_s8, [#allocation4], %s1336_s14, %s1336_s14, %s1337_s15   ;;  %vm929_vm0 = vcmask 7168  }
 0x343   :  { %v882_v41 = vpop.xlane.xlu0 %881 }
 0x344   :  { %v913_v45 = vadd.f32 113.94838, %v882_v41 }
 0x346   :  { %930 = vst.msk [vmem:[%s1705_s9] sm:$0xff] %vm929_vm0, %v913_v45 }
 0x347   :  { %v884_v52 = vpop.xlane.xlu0 %883 }
 0x348   :  { %v914_v3 = vadd.f32 113.94838, %v884_v52 }
 0x34a   :  { %931 = vst.msk [vmem:[%s1705_s9 + $0x8] sm:$0xff] %vm929_vm0, %v914_v3 }
 0x34b   :  { %v886_v4 = vpop.xlane.xlu1 %885 }
 0x34c   :  { %v915_v5 = vadd.f32 113.94838, %v886_v4 }
 0x34e   :  { %932 = vst.msk [vmem:[%s1705_s9 + $0x10] sm:$0xff] %vm929_vm0, %v915_v5 }
 0x34f   :  { %v888_v7 = vpop.xlane.xlu1 %887 }
 0x350   :  { %v916_v9 = vadd.f32 113.94838, %v888_v7 }
 0x352   :  { %933 = vst.msk [vmem:[%s1705_s9 + $0x18] sm:$0xff] %vm929_vm0, %v916_v9 }
 0x354   :  { %v890_v55 = vpop.xlane.xlu0 %889 }
 0x355   :  { %v917_v10 = vadd.f32 113.94838, %v890_v55 }
 0x357   :  { %934 = vst.msk [vmem:[%s1705_s9 + $0x20] sm:$0xff] %vm929_vm0, %v917_v10 }
 0x358   :  { %v892_v11 = vpop.xlane.xlu1 %891 }
 0x359   :  { %v918_v29 = vadd.f32 113.94838, %v892_v11 }
 0x35b   :  { %935 = vst.msk [vmem:[%s1705_s9 + $0x28] sm:$0xff] %vm929_vm0, %v918_v29 }
 0x35c   :  { %v894_v27 = vpop.xlane.xlu0 %893 }
 0x35d   :  { %v919_v15 = vadd.f32 113.94838, %v894_v27 }
 0x35f   :  { %936 = vst.msk [vmem:[%s1705_s9 + $0x30] sm:$0xff] %vm929_vm0, %v919_v15 }
 0x360   :  { %v896_v16 = vpop.xlane.xlu1 %895 }
 0x361   :  { %v920_v18 = vadd.f32 113.94838, %v896_v16 }
 0x363   :  { %937 = vst.msk [vmem:[%s1705_s9 + $0x38] sm:$0xff] %vm929_vm0, %v920_v18 }
 0x364   :  { %v898_v19 = vpop.xlane.xlu0 %897 }
 0x365   :  { %v921_v20 = vadd.f32 113.94838, %v898_v19 }
 0x367   :  { %938 = vst.msk [vmem:[%s1705_s9 + $0x40] sm:$0xff] %vm929_vm0, %v921_v20 }
 0x368   :  { %v900_v24 = vpop.xlane.xlu1 %899 }
 0x369   :  { %v922_v21 = vadd.f32 113.94838, %v900_v24 }
 0x36b   :  { %939 = vst.msk [vmem:[%s1705_s9 + $0x48] sm:$0xff] %vm929_vm0, %v922_v21 }
 0x36c   :  { %v902_v23 = vpop.xlane.xlu0 %901 }
 0x36d   :  { %v923_v22 = vadd.f32 113.94838, %v902_v23 }
 0x36f   :  { %940 = vst.msk [vmem:[%s1705_s9 + $0x50] sm:$0xff] %vm929_vm0, %v923_v22 }
 0x370   :  { %v904_v62 = vpop.xlane.xlu1 %903 }
 0x371   :  { %v924_v60 = vadd.f32 113.94838, %v904_v62 }
 0x373   :  { %941 = vst.msk [vmem:[%s1705_s9 + $0x58] sm:$0xff] %vm929_vm0, %v924_v60 }
 0x374   :  { %v906_v25 = vpop.xlane.xlu0 %905 }
 0x375   :  { %v925_v26 = vadd.f32 113.94838, %v906_v25 }
 0x377   :  { %942 = vst.msk [vmem:[%s1705_s9 + $0x60] sm:$0xff] %vm929_vm0, %v925_v26 }
 0x378   :  { %v908_v40 = vpop.xlane.xlu1 %907 }
 0x379   :  { %v926_v39 = vadd.f32 113.94838, %v908_v40 }
 0x37b   :  { %943 = vst.msk [vmem:[%s1705_s9 + $0x68] sm:$0xff] %vm929_vm0, %v926_v39  ;;  %v910_v31 = vpop.xlane.xlu0 %909 }
 0x37c   :  { %v927_v32 = vadd.f32 113.94838, %v910_v31 }
 0x37e   :  { %944 = vst.msk [vmem:[%s1705_s9 + $0x70] sm:$0xff] %vm929_vm0, %v927_v32 }
 0x37f   :  { %v912_v33 = vpop.xlane.xlu1 %911 }
 0x380   :  { %v928_v34 = vadd.f32 113.94838, %v912_v33 }
 0x382   :  { %945 = vst.msk [vmem:[%s1705_s9 + $0x78] sm:$0xff] %vm929_vm0, %v928_v34 }
 0x383   :  { %1332 = dma.done.wait [#allocation4], 2048  }
 0x384   :  { %1333 = vsyncadd [#allocation4], 4294965248 }
 0x385   :  { %965 = vsyncpa [#allocation3], 1 }
 0x386   :  { %966 = vsyncpa [#allocation6], 1 }
 0x387   :  { %967 = vsyncpa [#allocation9], 1 }
 0x388   :  { %968 = vsyncpa [#allocation4], 1 }

</bundles_post_ra>
